<compile_context>
chip_gen: v6e
topology: v6e:2x2x1
jax: 0.10.0
libtpu: 0.0.40
codegen_flags: <defaults>
</compile_context>

<pallas_src>
import jax
import jax.numpy as jnp
from jax.experimental import pallas as pl
from jax.experimental.pallas import tpu as pltpu

K_IN = 100
K_PAD = 128
H1, H2, H3 = 256, 512, 1024


def _cdiv(a, b):
    return -(-a // b)


def _round_up(x, m):
    return ((x + m - 1) // m) * m


def _leaky_relu(x, slope=0.2):
    # max(x, slope*x) == leaky_relu(x, slope) for slope in (0, 1).
    return jnp.maximum(x, slope * x)


def _fc12(x, w1_ref, b1_ref, w2_ref, b2_ref):
    h = jnp.dot(x.astype(jnp.bfloat16), w1_ref[...],
                preferred_element_type=jnp.float32)
    h = _leaky_relu(h + b1_ref[...])
    h = jnp.dot(h.astype(jnp.bfloat16), w2_ref[...],
                preferred_element_type=jnp.float32)
    return _leaky_relu(h + b2_ref[...])


def _fc34(h, w3, b3_ref, w4, b4_ref):
    h = jnp.dot(h.astype(jnp.bfloat16), w3,
                preferred_element_type=jnp.float32)
    h = _leaky_relu(h + b3_ref[...])
    h = jnp.dot(h.astype(jnp.bfloat16), w4,
                preferred_element_type=jnp.float32)
    return jnp.tanh(h + b4_ref[...])


def _gen_kernel_resident(x_ref, w1_ref, b1_ref, w2_ref, b2_ref,
                         w3_ref, b3_ref, w4_ref, b4_ref, out_ref):
    h = _fc12(x_ref[...], w1_ref, b1_ref, w2_ref, b2_ref)
    out_ref[...] = _fc34(h, w3_ref[...], b3_ref, w4_ref[...], b4_ref
                         ).astype(out_ref.dtype)


def _gen_kernel_overlap(x_ref, w1_ref, b1_ref, w2_ref, b2_ref,
                        w3_hbm, b3_ref, w4_hbm, b4_ref, out_ref,
                        w3_vmem, w4_vmem, dma_sem):
    # Kick off the big-layer weight DMAs immediately; fc1/fc2 compute (whose
    # operands were auto-pipelined into VMEM already) overlaps the transfer.
    cp3 = pltpu.make_async_copy(w3_hbm, w3_vmem, dma_sem.at[0])
    cp4 = pltpu.make_async_copy(w4_hbm, w4_vmem, dma_sem.at[1])
    cp3.start()
    cp4.start()
    h = _fc12(x_ref[...], w1_ref, b1_ref, w2_ref, b2_ref)
    cp3.wait()
    cp4.wait()
    out_ref[...] = _fc34(h, w3_vmem[...], b3_ref, w4_vmem[...], b4_ref
                         ).astype(out_ref.dtype)


def prepare_params(params):
    """One-time weight preparation (hoisted out of the per-forward path):
      * pads fc1's contraction dim 100 -> 128 and fc4's output dim to a
        lane/MXU-friendly width (exact: zero padding),
      * casts weights to bf16 (accumulation stays f32 on the MXU),
      * keeps biases f32, shaped (1, N).
    Returns a dict of device arrays for generator_forward."""
    G = params["w4"].shape[-1]
    G_pad = K_PAD if G <= K_PAD else _round_up(G, 256)

    def bias(b, pad_to=None):
        b = jnp.asarray(b, jnp.float32).reshape(1, -1)
        if pad_to is not None and pad_to > b.shape[1]:
            b = jnp.pad(b, ((0, 0), (0, pad_to - b.shape[1])))
        return b

    w1 = jnp.pad(jnp.asarray(params["w1"], jnp.float32),
                 ((0, K_PAD - K_IN), (0, 0))).astype(jnp.bfloat16)
    w4 = jnp.pad(jnp.asarray(params["w4"], jnp.float32),
                 ((0, 0), (0, G_pad - G))).astype(jnp.bfloat16)
    return {
        "w1": w1, "b1": bias(params["b1"]),
        "w2": jnp.asarray(params["w2"], jnp.float32).astype(jnp.bfloat16),
        "b2": bias(params["b2"]),
        "w3": jnp.asarray(params["w3"], jnp.float32).astype(jnp.bfloat16),
        "b3": bias(params["b3"]),
        "w4": w4, "b4": bias(params["b4"], pad_to=G_pad),
    }


def generator_forward(x, prepped, g_output_dim, *, batch_tile=256,
                      out_dtype=jnp.float32):
    """x: (B, 100) f32; prepped: output of prepare_params().
    Returns (B, g_output_dim) in out_dtype."""
    B, K = x.shape
    assert K == K_IN
    G_pad = prepped["w4"].shape[1]
    assert g_output_dim <= G_pad

    # Batch tiling: multiple of 8 (f32 sublane granularity).  For B >
    # batch_tile pick the smallest tile keeping the same number of grid
    # steps, so at most 7 padded rows per tile are ever computed.
    if B <= batch_tile:
        n_tiles = 1
        TB = max(8, _round_up(B, 8))
    else:
        n_tiles = _cdiv(B, batch_tile)
        TB = _round_up(_cdiv(B, n_tiles), 8)
    B_pad = n_tiles * TB

    x_p = jnp.pad(x.astype(jnp.float32), ((0, B_pad - B), (0, K_PAD - K)))

    def const_spec(arr):
        # Full array, constant block index -> DMA'd once, stays resident.
        return pl.BlockSpec(arr.shape, lambda i: (0, 0))

    x_spec = pl.BlockSpec((TB, K_PAD), lambda i: (i, 0))
    out_spec = pl.BlockSpec((TB, G_pad), lambda i: (i, 0))
    out_shape = jax.ShapeDtypeStruct((B_pad, G_pad), out_dtype)
    args = (x_p,
            prepped["w1"], prepped["b1"], prepped["w2"], prepped["b2"],
            prepped["w3"], prepped["b3"], prepped["w4"], prepped["b4"])

    if n_tiles == 1:
        # Small-batch path: the grid has a single step, so the weight load is
        # otherwise fully exposed -> manually overlap the w3/w4 DMA with
        # fc1/fc2 compute.
        # TODO(synk): a v7x-only column-split of fc3/fc4 across the two
        # TensorCores would further halve tiny-batch latency; not implemented.
        out = pl.pallas_call(
            _gen_kernel_overlap,
            out_shape=out_shape,
            grid=(1,),
            in_specs=[
                x_spec,
                const_spec(prepped["w1"]), const_spec(prepped["b1"]),
                const_spec(prepped["w2"]), const_spec(prepped["b2"]),
                pl.BlockSpec(memory_space=pl.ANY), const_spec(prepped["b3"]),
                pl.BlockSpec(memory_space=pl.ANY), const_spec(prepped["b4"]),
            ],
            out_specs=out_spec,
            scratch_shapes=[
                pltpu.VMEM(prepped["w3"].shape, jnp.bfloat16),
                pltpu.VMEM(prepped["w4"].shape, jnp.bfloat16),
                pltpu.SemaphoreType.DMA((2,)),
            ],
            compiler_params=pltpu.CompilerParams(
                dimension_semantics=("arbitrary",)),
        )(*args)
    else:
        # Large-batch path: weights resident in VMEM for the whole grid,
        # activation tiles pipelined, batch axis megacore-parallel.
        out = pl.pallas_call(
            _gen_kernel_resident,
            out_shape=out_shape,
            grid=(n_tiles,),
            in_specs=[
                x_spec,
                const_spec(prepped["w1"]), const_spec(prepped["b1"]),
                const_spec(prepped["w2"]), const_spec(prepped["b2"]),
                const_spec(prepped["w3"]), const_spec(prepped["b3"]),
                const_spec(prepped["w4"]), const_spec(prepped["b4"]),
            ],
            out_specs=out_spec,
            compiler_params=pltpu.CompilerParams(
                dimension_semantics=("parallel",)),
        )(*args)

    return out[:B, :g_output_dim]


def init_params(key, g_output_dim):
    """Deterministic init mimicking PyTorch nn.Linear default:
    U(-1/sqrt(fan_in), 1/sqrt(fan_in)) for both weight and bias."""
    dims = [(K_IN, H1), (H1, H2), (H2, H3), (H3, g_output_dim)]
    params = {}
    for i, (fan_in, fan_out) in enumerate(dims, start=1):
        key, kw, kb = jax.random.split(key, 3)
        bound = 1.0 / (fan_in ** 0.5)
        params[f"w{i}"] = jax.random.uniform(
            kw, (fan_in, fan_out), jnp.float32, minval=-bound, maxval=bound)
        params[f"b{i}"] = jax.random.uniform(
            kb, (1, fan_out), jnp.float32, minval=-bound, maxval=bound)
    return params


def reference_forward(x, p):
    """Pure-JAX reference using the same bf16-weight / f32-accumulate math."""
    def lin(h, w, b):
        return jnp.dot(h.astype(jnp.bfloat16), w.astype(jnp.bfloat16),
                       preferred_element_type=jnp.float32) + b
    h = _leaky_relu(lin(x, p["w1"], p["b1"]))
    h = _leaky_relu(lin(h, p["w2"], p["b2"]))
    h = _leaky_relu(lin(h, p["w3"], p["b3"]))
    return jnp.tanh(lin(h, p["w4"], p["b4"]))


if __name__ == "__main__":
    key = jax.random.PRNGKey(0)
    key, kx1, kx2 = jax.random.split(key, 3)

    g_output_dim = 64            # small synthetic output dim
    params = init_params(key, g_output_dim)
    prepped = prepare_params(params)   # one-time weight prep (hoisted)

    # Small batch -> single-tile, DMA-overlap path.
    x_small = jax.random.normal(kx1, (2, K_IN), dtype=jnp.float32)
    out_small = jax.block_until_ready(
        generator_forward(x_small, prepped, g_output_dim))
    ref_small = reference_forward(x_small, params)
    assert out_small.shape == (2, g_output_dim)
    assert jnp.allclose(out_small, ref_small, atol=1e-2, rtol=1e-2), \
        "small-batch mismatch vs JAX reference"

    # Larger batch -> multi-tile, resident-weight pipelined path.
    x_big = jax.random.normal(kx2, (48, K_IN), dtype=jnp.float32)
    out_big = jax.block_until_ready(
        generator_forward(x_big, prepped, g_output_dim, batch_tile=16))
    ref_big = reference_forward(x_big, params)
    assert out_big.shape == (48, g_output_dim)
    assert jnp.allclose(out_big, ref_big, atol=1e-2, rtol=1e-2), \
        "large-batch mismatch vs JAX reference"

    print("KERNEL_OK")
</pallas_src>

<mosaic_0001>
module attributes {stable_mosaic.version = 11 : i64} {
  func.func @_gen_kernel_overlap(%arg0: i32, %arg1: memref<8x128xf32, #tpu.memory_space<vmem>>, %arg2: memref<128x256xbf16, #tpu.memory_space<vmem>>, %arg3: memref<1x256xf32, #tpu.memory_space<vmem>>, %arg4: memref<256x512xbf16, #tpu.memory_space<vmem>>, %arg5: memref<1x512xf32, #tpu.memory_space<vmem>>, %arg6: memref<512x1024xbf16, #tpu.memory_space<any>>, %arg7: memref<1x1024xf32, #tpu.memory_space<vmem>>, %arg8: memref<1024x128xbf16, #tpu.memory_space<any>>, %arg9: memref<1x128xf32, #tpu.memory_space<vmem>>, %arg10: memref<8x128xf32, #tpu.memory_space<vmem>>, %arg11: memref<512x1024xbf16, #tpu.memory_space<vmem>>, %arg12: memref<1024x128xbf16, #tpu.memory_space<vmem>>, %arg13: memref<2x!tpu.dma_semaphore, #tpu.memory_space<semaphore_mem>>) attributes {dimension_semantics = [#tpu.dimension_semantics<arbitrary>], iteration_bounds = array<i64: 1>, scalar_prefetch = 0 : i64, scratch_operands = 3 : i64, tpu.core_type = #tpu.core_type<tc>, window_params = [{transform_indices = @transform_0, window_bounds = array<i64: 8, 128>}, {pipeline_mode = #tpu.pipeline_mode<synchronous>, transform_indices = @transform_1, window_bounds = array<i64: 128, 256>}, {pipeline_mode = #tpu.pipeline_mode<synchronous>, transform_indices = @transform_2, window_bounds = array<i64: 1, 256>}, {pipeline_mode = #tpu.pipeline_mode<synchronous>, transform_indices = @transform_3, window_bounds = array<i64: 256, 512>}, {pipeline_mode = #tpu.pipeline_mode<synchronous>, transform_indices = @transform_4, window_bounds = array<i64: 1, 512>}, {}, {pipeline_mode = #tpu.pipeline_mode<synchronous>, transform_indices = @transform_6, window_bounds = array<i64: 1, 1024>}, {}, {pipeline_mode = #tpu.pipeline_mode<synchronous>, transform_indices = @transform_8, window_bounds = array<i64: 1, 128>}, {transform_indices = @transform_9, window_bounds = array<i64: 8, 128>}]} {
    %c0_i32 = arith.constant 0 : i32
    %0 = tpu.memref_slice %arg13[%c0_i32] : memref<2x!tpu.dma_semaphore, #tpu.memory_space<semaphore_mem>> -> memref<1x!tpu.dma_semaphore, #tpu.memory_space<semaphore_mem>>
    %1 = tpu.memref_squeeze %0 : memref<1x!tpu.dma_semaphore, #tpu.memory_space<semaphore_mem>> -> memref<!tpu.dma_semaphore, #tpu.memory_space<semaphore_mem>>
    tpu.enqueue_dma source(%arg6 : memref<512x1024xbf16, #tpu.memory_space<any>>) target(%arg11 : memref<512x1024xbf16, #tpu.memory_space<vmem>>) target_semaphore(%1 : memref<!tpu.dma_semaphore, #tpu.memory_space<semaphore_mem>>)
    %c1_i32 = arith.constant 1 : i32
    %2 = tpu.memref_slice %arg13[%c1_i32] : memref<2x!tpu.dma_semaphore, #tpu.memory_space<semaphore_mem>> -> memref<1x!tpu.dma_semaphore, #tpu.memory_space<semaphore_mem>>
    %3 = tpu.memref_squeeze %2 : memref<1x!tpu.dma_semaphore, #tpu.memory_space<semaphore_mem>> -> memref<!tpu.dma_semaphore, #tpu.memory_space<semaphore_mem>>
    tpu.enqueue_dma source(%arg8 : memref<1024x128xbf16, #tpu.memory_space<any>>) target(%arg12 : memref<1024x128xbf16, #tpu.memory_space<vmem>>) target_semaphore(%3 : memref<!tpu.dma_semaphore, #tpu.memory_space<semaphore_mem>>)
    %c0 = arith.constant 0 : index
    %c0_0 = arith.constant 0 : index
    %4 = vector.load %arg1[%c0, %c0_0] : memref<8x128xf32, #tpu.memory_space<vmem>>, vector<8x128xf32>
    %5 = arith.truncf %4 : vector<8x128xf32> to vector<8x128xbf16>
    %c0_1 = arith.constant 0 : index
    %c0_2 = arith.constant 0 : index
    %6 = vector.load %arg2[%c0_1, %c0_2] : memref<128x256xbf16, #tpu.memory_space<vmem>>, vector<128x256xbf16>
    %cst = arith.constant dense<0.000000e+00> : vector<8x256xf32>
    %7 = tpu.matmul %5, %6, %cst {dimension_numbers = #tpu.dot_dimension_numbers<[1], [0], [0], [1], [0, 0, 1, 1], [], []>} : vector<8x128xbf16>, vector<128x256xbf16>, vector<8x256xf32> -> vector<8x256xf32>
    %c0_3 = arith.constant 0 : index
    %c0_4 = arith.constant 0 : index
    %8 = vector.load %arg3[%c0_3, %c0_4] : memref<1x256xf32, #tpu.memory_space<vmem>>, vector<1x256xf32>
    %9 = vector.broadcast %8 : vector<1x256xf32> to vector<8x256xf32>
    %10 = arith.addf %7, %9 : vector<8x256xf32>
    %cst_5 = arith.constant 2.000000e-01 : f32
    %11 = vector.broadcast %cst_5 : f32 to vector<8x256xf32>
    %12 = arith.mulf %11, %10 : vector<8x256xf32>
    %13 = arith.maximumf %10, %12 : vector<8x256xf32>
    %14 = arith.truncf %13 : vector<8x256xf32> to vector<8x256xbf16>
    %c0_6 = arith.constant 0 : index
    %c0_7 = arith.constant 0 : index
    %15 = vector.load %arg4[%c0_6, %c0_7] : memref<256x512xbf16, #tpu.memory_space<vmem>>, vector<256x512xbf16>
    %cst_8 = arith.constant dense<0.000000e+00> : vector<8x512xf32>
    %16 = tpu.matmul %14, %15, %cst_8 {dimension_numbers = #tpu.dot_dimension_numbers<[1], [0], [0], [1], [0, 0, 1, 1], [], []>} : vector<8x256xbf16>, vector<256x512xbf16>, vector<8x512xf32> -> vector<8x512xf32>
    %c0_9 = arith.constant 0 : index
    %c0_10 = arith.constant 0 : index
    %17 = vector.load %arg5[%c0_9, %c0_10] : memref<1x512xf32, #tpu.memory_space<vmem>>, vector<1x512xf32>
    %18 = vector.broadcast %17 : vector<1x512xf32> to vector<8x512xf32>
    %19 = arith.addf %16, %18 : vector<8x512xf32>
    %cst_11 = arith.constant 2.000000e-01 : f32
    %20 = vector.broadcast %cst_11 : f32 to vector<8x512xf32>
    %21 = arith.mulf %20, %19 : vector<8x512xf32>
    %22 = arith.maximumf %19, %21 : vector<8x512xf32>
    %c0_i32_12 = arith.constant 0 : i32
    %23 = tpu.memref_slice %arg13[%c0_i32_12] : memref<2x!tpu.dma_semaphore, #tpu.memory_space<semaphore_mem>> -> memref<1x!tpu.dma_semaphore, #tpu.memory_space<semaphore_mem>>
    %24 = tpu.memref_squeeze %23 : memref<1x!tpu.dma_semaphore, #tpu.memory_space<semaphore_mem>> -> memref<!tpu.dma_semaphore, #tpu.memory_space<semaphore_mem>>
    tpu.wait_dma2 semaphore(%24 : memref<!tpu.dma_semaphore, #tpu.memory_space<semaphore_mem>>) src(%arg6 : memref<512x1024xbf16, #tpu.memory_space<any>>) dst(%arg11 : memref<512x1024xbf16, #tpu.memory_space<vmem>>)
    %c1_i32_13 = arith.constant 1 : i32
    %25 = tpu.memref_slice %arg13[%c1_i32_13] : memref<2x!tpu.dma_semaphore, #tpu.memory_space<semaphore_mem>> -> memref<1x!tpu.dma_semaphore, #tpu.memory_space<semaphore_mem>>
    %26 = tpu.memref_squeeze %25 : memref<1x!tpu.dma_semaphore, #tpu.memory_space<semaphore_mem>> -> memref<!tpu.dma_semaphore, #tpu.memory_space<semaphore_mem>>
    tpu.wait_dma2 semaphore(%26 : memref<!tpu.dma_semaphore, #tpu.memory_space<semaphore_mem>>) src(%arg8 : memref<1024x128xbf16, #tpu.memory_space<any>>) dst(%arg12 : memref<1024x128xbf16, #tpu.memory_space<vmem>>)
    %c0_14 = arith.constant 0 : index
    %c0_15 = arith.constant 0 : index
    %27 = vector.load %arg11[%c0_14, %c0_15] : memref<512x1024xbf16, #tpu.memory_space<vmem>>, vector<512x1024xbf16>
    %c0_16 = arith.constant 0 : index
    %c0_17 = arith.constant 0 : index
    %28 = vector.load %arg12[%c0_16, %c0_17] : memref<1024x128xbf16, #tpu.memory_space<vmem>>, vector<1024x128xbf16>
    %29 = arith.truncf %22 : vector<8x512xf32> to vector<8x512xbf16>
    %cst_18 = arith.constant dense<0.000000e+00> : vector<8x1024xf32>
    %30 = tpu.matmul %29, %27, %cst_18 {dimension_numbers = #tpu.dot_dimension_numbers<[1], [0], [0], [1], [0, 0, 1, 1], [], []>} : vector<8x512xbf16>, vector<512x1024xbf16>, vector<8x1024xf32> -> vector<8x1024xf32>
    %c0_19 = arith.constant 0 : index
    %c0_20 = arith.constant 0 : index
    %31 = vector.load %arg7[%c0_19, %c0_20] : memref<1x1024xf32, #tpu.memory_space<vmem>>, vector<1x1024xf32>
    %32 = vector.broadcast %31 : vector<1x1024xf32> to vector<8x1024xf32>
    %33 = arith.addf %30, %32 : vector<8x1024xf32>
    %cst_21 = arith.constant 2.000000e-01 : f32
    %34 = vector.broadcast %cst_21 : f32 to vector<8x1024xf32>
    %35 = arith.mulf %34, %33 : vector<8x1024xf32>
    %36 = arith.maximumf %33, %35 : vector<8x1024xf32>
    %37 = arith.truncf %36 : vector<8x1024xf32> to vector<8x1024xbf16>
    %cst_22 = arith.constant dense<0.000000e+00> : vector<8x128xf32>
    %38 = tpu.matmul %37, %28, %cst_22 {dimension_numbers = #tpu.dot_dimension_numbers<[1], [0], [0], [1], [0, 0, 1, 1], [], []>} : vector<8x1024xbf16>, vector<1024x128xbf16>, vector<8x128xf32> -> vector<8x128xf32>
    %c0_23 = arith.constant 0 : index
    %c0_24 = arith.constant 0 : index
    %39 = vector.load %arg9[%c0_23, %c0_24] : memref<1x128xf32, #tpu.memory_space<vmem>>, vector<1x128xf32>
    %40 = vector.broadcast %39 : vector<1x128xf32> to vector<8x128xf32>
    %41 = arith.addf %38, %40 : vector<8x128xf32>
    %42 = math.tanh %41 : vector<8x128xf32>
    %c0_25 = arith.constant 0 : index
    %c0_26 = arith.constant 0 : index
    %43 = vector.load %arg10[%c0_25, %c0_26] : memref<8x128xf32, #tpu.memory_space<vmem>>, vector<8x128xf32>
    tpu.vector_store %arg10[%c0_25, %c0_26], %42 {strides = array<i32>} : memref<8x128xf32, #tpu.memory_space<vmem>>, vector<8x128xf32>,
    return
  }
  func.func @transform_0(%arg0: i32) -> (i32, i32) {
    %c0_i32 = arith.constant 0 : i32
    %c0_i32_0 = arith.constant 0 : i32
    return %arg0, %c0_i32 : i32, i32
  }
  func.func @transform_1(%arg0: i32) -> (i32, i32) {
    %c0_i32 = arith.constant 0 : i32
    %c0_i32_0 = arith.constant 0 : i32
    %c0_i32_1 = arith.constant 0 : i32
    return %c0_i32, %c0_i32_0 : i32, i32
  }
  func.func @transform_2(%arg0: i32) -> (i32, i32) {
    %c0_i32 = arith.constant 0 : i32
    %c0_i32_0 = arith.constant 0 : i32
    %c0_i32_1 = arith.constant 0 : i32
    return %c0_i32, %c0_i32_0 : i32, i32
  }
  func.func @transform_3(%arg0: i32) -> (i32, i32) {
    %c0_i32 = arith.constant 0 : i32
    %c0_i32_0 = arith.constant 0 : i32
    %c0_i32_1 = arith.constant 0 : i32
    return %c0_i32, %c0_i32_0 : i32, i32
  }
  func.func @transform_4(%arg0: i32) -> (i32, i32) {
    %c0_i32 = arith.constant 0 : i32
    %c0_i32_0 = arith.constant 0 : i32
    %c0_i32_1 = arith.constant 0 : i32
    return %c0_i32, %c0_i32_0 : i32, i32
  }
  func.func @transform_6(%arg0: i32) -> (i32, i32) {
    %c0_i32 = arith.constant 0 : i32
    %c0_i32_0 = arith.constant 0 : i32
    %c0_i32_1 = arith.constant 0 : i32
    return %c0_i32, %c0_i32_0 : i32, i32
  }
  func.func @transform_8(%arg0: i32) -> (i32, i32) {
    %c0_i32 = arith.constant 0 : i32
    %c0_i32_0 = arith.constant 0 : i32
    %c0_i32_1 = arith.constant 0 : i32
    return %c0_i32, %c0_i32_0 : i32, i32
  }
  func.func @transform_9(%arg0: i32) -> (i32, i32) {
    %c0_i32 = arith.constant 0 : i32
    %c0_i32_0 = arith.constant 0 : i32
    return %arg0, %c0_i32 : i32, i32
  }
}

</mosaic_0001>

<bundles_post_ra>
// kernel: tpu_custom_call.1
= control target key start
LH: loop header
LB: loop body
LE: loop exit
PB: predicated region body
PF: predicated region fallthrough
CT: control target
= control target key end

     0   :  { %14 = vsyncpa [#allocation6], 0  ;;  %s4413_s0 = inlined_call_operand.hbm [shape: f32[8,128], index: 0, kind: input, shape index: {}]   ;;  %s4414_s1 = inlined_call_operand.hbm [shape: bf16[128,256], index: 1, kind: input, shape index: {}]   ;;  %s4415_s2 = inlined_call_operand.vmem [shape: f32[1,256], index: 2, kind: input, shape index: {}]   ;;  %s4416_s3 = inlined_call_operand.hbm [shape: bf16[256,512], index: 3, kind: input, shape index: {}]   ;;  %s4417_s4 = inlined_call_operand.hbm [shape: f32[1,512], index: 4, kind: input, shape index: {}]   ;;  %s4418_s5 = inlined_call_operand.hbm [shape: bf16[512,1024], index: 5, kind: input, shape index: {}]   ;;  %s4419_s6 = inlined_call_operand.vmem [shape: f32[1,1024], index: 6, kind: input, shape index: {}]   ;;  %s4420_s7 = inlined_call_operand.hbm [shape: bf16[1024,128], index: 7, kind: input, shape index: {}]   ;;  %s4421_s8 = inlined_call_operand.vmem [shape: f32[1,128], index: 8, kind: input, shape index: {}]   ;;  %s4422_s9 = inlined_call_operand.hbm [shape: f32[8,128], index: 9, kind: output, shape index: {}]  }
   0x1   :  { %15 = vsyncpa [#allocation9], 0 }
   0x2   :  { %16 = vsyncpa [#allocation12], 0 }
   0x3   :  { %17 = vsyncpa [#allocation7], 0  ;;  %s4251_s30 = smov [#allocation8]  }
   0x4   :  { %s33_s10 = sshll.u32 %s4251_s30, 4  ;;  %s34_s10 = int_to_ptr.vmem [resolvable:$true] %s33_s10 }
   0x5   :  { %s4107_s11 = scalar_lea.vmem %s34_s10, 2048  ;;  %p4112_p1 = scmp.lt.s32.totalorder %s34_s10, %s34_s10 }
   0x6   :  { %p4108_p0 = scmp.ne.s32.totalorder %s34_s10, %s4107_s11  ;;  %p4113_p2 = scmp.lt.s32.totalorder %s4107_s11, %s4107_s11 }
   0x8   :  { %p4114_p3 = por %p4113_p2, %p4112_p1 }
   0xa   :  { %p4115_p4 = pnand %p4114_p3, %p4108_p0 }
   0xc   :  { %4118 = shalt.err (!%p4115_p4)
}
   0xd   :  { %s4252_s12 = smov 128   ;;  %s4253_s13 = smov 8  }
   0xe   :  { %39 = dma.hbm_to_vmem [thread:$0]  %s4414_s1, 2048, %s34_s10, [#allocation9], %s4252_s12, %s4252_s12, %s4253_s13  }
   0xf   :  { %s4254_s16 = smov [#allocation5]   ;;  %s4255_s18 = smov [#allocation10]  }
  0x10   :  { %s24_s17 = sshll.u32 %s4254_s16, 4  ;;  %s47_s19 = sshll.u32 %s4255_s18, 4  ;;  %s25_s17 = int_to_ptr.vmem [resolvable:$true] %s24_s17  ;;  %s48_s19 = int_to_ptr.vmem [resolvable:$true] %s47_s19 }
  0x11   :  { %s4127_s20 = scalar_lea.vmem %s25_s17, 128  ;;  %p4132_p6 = scmp.lt.s32.totalorder %s25_s17, %s25_s17 }
  0x12   :  { %p4128_p5 = scmp.ne.s32.totalorder %s25_s17, %s4127_s20  ;;  %p4133_p7 = scmp.lt.s32.totalorder %s4127_s20, %s4127_s20 }
  0x14   :  { %p4134_p8 = por %p4133_p7, %p4132_p6 }
  0x16   :  { %p4135_p9 = pnand %p4134_p8, %p4128_p5 }
  0x18   :  { %4138 = shalt.err (!%p4135_p9)
}
  0x19   :  { %27 = dma.hbm_to_vmem [thread:$0]  %s4413_s0, 128, %s25_s17, [#allocation6]  }
  0x1a   :  { %s4147_s23 = scalar_lea.vmem %s48_s19, 8192  ;;  %p4152_p11 = scmp.lt.s32.totalorder %s48_s19, %s48_s19 }
  0x1b   :  { %p4148_p10 = scmp.ne.s32.totalorder %s48_s19, %s4147_s23  ;;  %p4153_p12 = scmp.lt.s32.totalorder %s4147_s23, %s4147_s23 }
  0x1d   :  { %p4154_p13 = por %p4153_p12, %p4152_p11 }
  0x1f   :  { %p4155_p0 = pnand %p4154_p13, %p4148_p10 }
  0x21   :  { %4158 = shalt.err (!%p4155_p0)
}
  0x22   :  { %s4256_s1 = smov 256   ;;  %s4257_s24 = smov 16  }
  0x23   :  { %53 = dma.hbm_to_vmem [thread:$0]  %s4416_s3, 8192, %s48_s19, [#allocation9], %s4256_s1, %s4256_s1, %s4257_s24  }
  0x24   :  { %s4258_s27 = smov [#allocation11]  }
  0x25   :  { %s60_s28 = sshll.u32 %s4258_s27, 4  ;;  %s61_s28 = int_to_ptr.vmem [resolvable:$true] %s60_s28 }
  0x26   :  { %s4167_s29 = scalar_lea.vmem %s61_s28, 64  ;;  %p4172_p2 = scmp.lt.s32.totalorder %s61_s28, %s61_s28 }
  0x27   :  { %p4168_p1 = scmp.ne.s32.totalorder %s61_s28, %s4167_s29  ;;  %p4173_p3 = scmp.lt.s32.totalorder %s4167_s29, %s4167_s29 }
  0x29   :  { %p4174_p4 = por %p4173_p3, %p4172_p2 }
  0x2b   :  { %p4175_p5 = pnand %p4174_p4, %p4168_p1 }
  0x2d   :  { %4178 = shalt.err (!%p4175_p5)
}
  0x2e   :  { %63 = dma.hbm_to_vmem [thread:$0]  %s4417_s4, 64, %s61_s28, [#allocation12]  }
  0x2f   :  { %4239 = dma.done.wait [#allocation6], 128  }
  0x30   :  { %4240 = vsyncadd [#allocation6], 4294967168 }
  0x31   :  { %4241 = dma.done.wait [#allocation9], 10240  }
  0x32   :  { %4242 = vsyncadd [#allocation9], 4294957056 }
  0x33   :  { %4243 = dma.done.wait [#allocation12], 64  }
  0x34   :  { %4244 = vsyncadd [#allocation12], 4294967232  ;;  %v4259_v0 = vmov 0   ;;  %v3913_v1 = vld [vmem:[#allocation8 + $0x74] ss:$8 sps:$4 sm:$0xff]   ;;  %s4261_s11 = smov [#allocation3]  }
  0x35   :  { %246 = vmatprep.mubr.bf16.mxu0 %v4259_v0  ;;  %v3915_v2 = vld [vmem:[#allocation8 + $0x70] ss:$8 sps:$4 sm:$0xff]   ;;  %214 = vmatprep.subr.bf16.mxu0 %v3913_v1  ;;  %v3916_v3 = vld [vmem:[#allocation8 + $0x64] ss:$8 sps:$4 sm:$0xff]   ;;  %v3918_v4 = vld [vmem:[#allocation8 + $0x60] ss:$8 sps:$4 sm:$0xff]  }
  0x36   :  { %215 = vmatpush1.bf16.msra.mxu0 %v3915_v2  ;;  %v3919_v5 = vld [vmem:[#allocation8 + $0x54] ss:$8 sps:$4 sm:$0xff]   ;;  %v3921_v6 = vld [vmem:[#allocation8 + $0x50] ss:$8 sps:$4 sm:$0xff]   ;;  %v3922_v7 = vld [vmem:[#allocation8 + $0x44] ss:$8 sps:$4 sm:$0xff]  }
  0x37   :  { %216 = vmatprep.subr.bf16.mxu0 %v3916_v3  ;;  %v3924_v8 = vld [vmem:[#allocation8 + $0x40] ss:$8 sps:$4 sm:$0xff]   ;;  %v3937_v9 = vld [vmem:[#allocation10 + $0xe4] ss:$16 sps:$4 sm:$0xff]   ;;  %v3927_v13 = vld [vmem:[#allocation8 + $0x30] ss:$8 sps:$4 sm:$0xff]  }
  0x38   :  { %v3925_v10 = vld [vmem:[#allocation8 + $0x34] ss:$8 sps:$4 sm:$0xff]   ;;  %667 = vmatprep.subr.bf16.mxu1 %v3937_v9  ;;  %v3942_v11 = vld [vmem:[#allocation10 + $0xe0] ss:$16 sps:$4 sm:$0xff]   ;;  %v3928_v14 = vld [vmem:[#allocation8 + $0x24] ss:$8 sps:$4 sm:$0xff]  }
  0x39   :  { %v3943_v12 = vld [vmem:[#allocation10 + $0xc4] ss:$16 sps:$4 sm:$0xff]   ;;  %668 = vmatpush1.bf16.msra.mxu1 %v3942_v11  ;;  %v3948_v15 = vld [vmem:[#allocation10 + $0xc0] ss:$16 sps:$4 sm:$0xff]   ;;  %v104_v26 = vld [vmem:[#allocation5] sm:$0xff]  ;;  %s100_s12 = sshll.u32 %s4261_s11, 4  ;;  %s101_s12 = int_to_ptr.vmem [resolvable:$true] %s100_s12 }
  0x3a   :  { %217 = vmatpush1.bf16.msra.mxu0 %v3918_v4  ;;  %669 = vmatprep.subr.bf16.mxu1 %v3943_v12  ;;  %v3949_v16 = vld [vmem:[#allocation10 + $0xa4] ss:$16 sps:$4 sm:$0xff]   ;;  %v3930_v17 = vld [vmem:[#allocation8 + $0x20] ss:$8 sps:$4 sm:$0xff]   ;;  %v3933_v21 = vld [vmem:[#allocation8 + $0x10] ss:$8 sps:$4 sm:$0xff]   ;;  %v105_v30 = vpack.c.bf16 %v104_v26, %v104_v26 }
  0x3b   :  { %218 = vmatprep.subr.bf16.mxu0 %v3919_v5  ;;  %v3931_v18 = vld [vmem:[#allocation8 + $0x14] ss:$8 sps:$4 sm:$0xff]   ;;  %v3954_v19 = vld [vmem:[#allocation10 + $0xa0] ss:$16 sps:$4 sm:$0xff]   ;;  %v3934_v22 = vld [vmem:[#allocation8 + $0x4] ss:$8 sps:$4 sm:$0xff]  }
  0x3c   :  { %v3955_v20 = vld [vmem:[#allocation10 + $0x84] ss:$16 sps:$4 sm:$0xff]   ;;  %v3960_v23 = vld [vmem:[#allocation10 + $0x80] ss:$16 sps:$4 sm:$0xff]   ;;  %v3941_v27 = vld [vmem:[#allocation10 + $0xec] ss:$16 sps:$4 sm:$0xff]  }
  0x3d   :  { %670 = vmatpush1.bf16.msra.mxu1 %v3948_v15  ;;  %v3961_v24 = vld [vmem:[#allocation10 + $0x64] ss:$16 sps:$4 sm:$0xff]   ;;  %v3936_v25 = vld [vmem:[#allocation8] ss:$8 sps:$4 sm:$0xff]   ;;  %v3947_v32 = vld [vmem:[#allocation10 + $0xcc] ss:$16 sps:$4 sm:$0xff]  }
  0x3e   :  { %219 = vmatpush1.bf16.msra.mxu0 %v3921_v6  ;;  %671 = vmatprep.subr.bf16.mxu1 %v3949_v16  ;;  %v3966_v28 = vld [vmem:[#allocation10 + $0x60] ss:$16 sps:$4 sm:$0xff]   ;;  %v3967_v29 = vld [vmem:[#allocation10 + $0x44] ss:$16 sps:$4 sm:$0xff]   ;;  %v3939_v31 = vld [vmem:[#allocation10 + $0xe8] ss:$16 sps:$4 sm:$0xff]  }
  0x3f   :  { %220 = vmatprep.subr.bf16.mxu0 %v3922_v7  ;;  %v3972_v33 = vld [vmem:[#allocation10 + $0x40] ss:$16 sps:$4 sm:$0xff]   ;;  %v3973_v34 = vld [vmem:[#allocation10 + $0x24] ss:$16 sps:$4 sm:$0xff]   ;;  %v3945_v35 = vld [vmem:[#allocation10 + $0xc8] ss:$16 sps:$4 sm:$0xff]  }
  0x40   :  { %v3953_v36 = vld [vmem:[#allocation10 + $0xac] ss:$16 sps:$4 sm:$0xff]   ;;  %v3978_v37 = vld [vmem:[#allocation10 + $0x20] ss:$16 sps:$4 sm:$0xff]   ;;  %v3979_v38 = vld [vmem:[#allocation10 + $0x4] ss:$16 sps:$4 sm:$0xff]  }
  0x41   :  { %672 = vmatpush1.bf16.msra.mxu1 %v3954_v19  ;;  %v3951_v39 = vld [vmem:[#allocation10 + $0xa8] ss:$16 sps:$4 sm:$0xff]   ;;  %v3959_v40 = vld [vmem:[#allocation10 + $0x8c] ss:$16 sps:$4 sm:$0xff]   ;;  %v3984_v41 = vld [vmem:[#allocation10] ss:$16 sps:$4 sm:$0xff]   ;;  %v124_v19 = vlaneseq }
  0x42   :  { %221 = vmatpush1.bf16.msra.mxu0 %v3924_v8  ;;  %673 = vmatprep.subr.bf16.mxu1 %v3955_v20  ;;  %v3985_v42 = vld [vmem:[#allocation10 + $0x1e4] ss:$16 sps:$4 sm:$0xff]   ;;  %v3957_v43 = vld [vmem:[#allocation10 + $0x88] ss:$16 sps:$4 sm:$0xff]   ;;  %v3965_v44 = vld [vmem:[#allocation10 + $0x6c] ss:$16 sps:$4 sm:$0xff]  }
  0x43   :  { %222 = vmatprep.subr.bf16.mxu0 %v3925_v10  ;;  %v3990_v45 = vld [vmem:[#allocation10 + $0x1e0] ss:$16 sps:$4 sm:$0xff]   ;;  %v3991_v46 = vld [vmem:[#allocation10 + $0x1c4] ss:$16 sps:$4 sm:$0xff]   ;;  %v3963_v47 = vld [vmem:[#allocation10 + $0x68] ss:$16 sps:$4 sm:$0xff]  }
  0x44   :  { %v3996_v48 = vld [vmem:[#allocation10 + $0x1c0] ss:$16 sps:$4 sm:$0xff]   ;;  %v3971_v49 = vld [vmem:[#allocation10 + $0x4c] ss:$16 sps:$4 sm:$0xff]   ;;  %v3997_v50 = vld [vmem:[#allocation10 + $0x1a4] ss:$16 sps:$4 sm:$0xff]  }
  0x45   :  { %674 = vmatpush1.bf16.msra.mxu1 %v3960_v23  ;;  %v3969_v51 = vld [vmem:[#allocation10 + $0x48] ss:$16 sps:$4 sm:$0xff]   ;;  %v4002_v52 = vld [vmem:[#allocation10 + $0x1a0] ss:$16 sps:$4 sm:$0xff]   ;;  %v3977_v53 = vld [vmem:[#allocation10 + $0x2c] ss:$16 sps:$4 sm:$0xff]  }
  0x46   :  { %223 = vmatpush1.bf16.msra.mxu0 %v3927_v13  ;;  %675 = vmatprep.subr.bf16.mxu1 %v3961_v24  ;;  %v4003_v54 = vld [vmem:[#allocation10 + $0x184] ss:$16 sps:$4 sm:$0xff]   ;;  %v3975_v55 = vld [vmem:[#allocation10 + $0x28] ss:$16 sps:$4 sm:$0xff]   ;;  %v4008_v56 = vld [vmem:[#allocation10 + $0x180] ss:$16 sps:$4 sm:$0xff]  }
  0x47   :  { %224 = vmatprep.subr.bf16.mxu0 %v3928_v14  ;;  %v3983_v57 = vld [vmem:[#allocation10 + $0xc] ss:$16 sps:$4 sm:$0xff]   ;;  %v4009_v58 = vld [vmem:[#allocation10 + $0x164] ss:$16 sps:$4 sm:$0xff]   ;;  %v3981_v59 = vld [vmem:[#allocation10 + $0x8] ss:$16 sps:$4 sm:$0xff]  }
  0x48   :  { %v4014_v60 = vld [vmem:[#allocation10 + $0x160] ss:$16 sps:$4 sm:$0xff]   ;;  %v3989_v61 = vld [vmem:[#allocation10 + $0x1ec] ss:$16 sps:$4 sm:$0xff]   ;;  %v3987_v62 = vld [vmem:[#allocation10 + $0x1e8] ss:$16 sps:$4 sm:$0xff]  }
  0x49   :  { %676 = vmatpush1.bf16.msra.mxu1 %v3966_v28  ;;  %v3995_v63 = vld [vmem:[#allocation10 + $0x1cc] ss:$16 sps:$4 sm:$0xff]   ;;  %v3993_v0 = vld [vmem:[#allocation10 + $0x1c8] ss:$16 sps:$4 sm:$0xff]   ;;  %v4015_v7 = vld [vmem:[#allocation10 + $0x144] ss:$16 sps:$4 sm:$0xff]  }
  0x4a   :  { %225 = vmatpush1.bf16.msra.mxu0 %v3930_v17  ;;  %677 = vmatprep.subr.bf16.mxu1 %v3967_v29  ;;  %v4001_v1 = vld [vmem:[#allocation10 + $0x1ac] ss:$16 sps:$4 sm:$0xff]   ;;  %v3999_v2 = vld [vmem:[#allocation10 + $0x1a8] ss:$16 sps:$4 sm:$0xff]   ;;  %v4020_v10 = vld [vmem:[#allocation10 + $0x140] ss:$16 sps:$4 sm:$0xff]  }
  0x4b   :  { %226 = vmatprep.subr.bf16.mxu0 %v3931_v18  ;;  %v4007_v3 = vld [vmem:[#allocation10 + $0x18c] ss:$16 sps:$4 sm:$0xff]   ;;  %v4005_v4 = vld [vmem:[#allocation10 + $0x188] ss:$16 sps:$4 sm:$0xff]   ;;  %v4021_v11 = vld [vmem:[#allocation10 + $0x124] ss:$16 sps:$4 sm:$0xff]  }
  0x4c   :  { %v4013_v5 = vld [vmem:[#allocation10 + $0x16c] ss:$16 sps:$4 sm:$0xff]   ;;  %v4011_v6 = vld [vmem:[#allocation10 + $0x168] ss:$16 sps:$4 sm:$0xff]   ;;  %v4026_v14 = vld [vmem:[#allocation10 + $0x120] ss:$16 sps:$4 sm:$0xff]  }
  0x4d   :  { %678 = vmatpush1.bf16.msra.mxu1 %v3972_v33  ;;  %v4019_v8 = vld [vmem:[#allocation10 + $0x14c] ss:$16 sps:$4 sm:$0xff]   ;;  %v4017_v9 = vld [vmem:[#allocation10 + $0x148] ss:$16 sps:$4 sm:$0xff]   ;;  %v4027_v15 = vld [vmem:[#allocation10 + $0x104] ss:$16 sps:$4 sm:$0xff]  }
  0x4e   :  { %227 = vmatpush1.bf16.msra.mxu0 %v3933_v21  ;;  %679 = vmatprep.subr.bf16.mxu1 %v3973_v34  ;;  %v4025_v12 = vld [vmem:[#allocation10 + $0x12c] ss:$16 sps:$4 sm:$0xff]   ;;  %v4023_v13 = vld [vmem:[#allocation10 + $0x128] ss:$16 sps:$4 sm:$0xff]   ;;  %v4032_v18 = vld [vmem:[#allocation10 + $0x100] ss:$16 sps:$4 sm:$0xff]  }
  0x4f   :  { %228 = vmatprep.subr.bf16.mxu0 %v3934_v22  ;;  %v4031_v16 = vld [vmem:[#allocation10 + $0x10c] ss:$16 sps:$4 sm:$0xff]   ;;  %v4029_v17 = vld [vmem:[#allocation10 + $0x108] ss:$16 sps:$4 sm:$0xff]   ;;  %v4325_v20 = vshrl.u32 %v124_v19, 7 }
  0x50   :  { %v122_v22 = vld [vmem:[%s4415_s2] sm:$0x3]  ;;  %s4260_s2 = smov [#allocation2]  }
  0x51   :  { %680 = vmatpush1.bf16.msra.mxu1 %v3978_v37  ;;  %v4328_v21 = vsub.s32 0, %v4325_v20  ;;  %v4334_v23 = vsub.s32 1, %v4325_v20  ;;  %s88_s10 = sshll.u32 %s4260_s2, 4  ;;  %s89_s10 = int_to_ptr.vmem [resolvable:$true] %s88_s10 }
  0x52   :  { %229 = vmatpush1.bf16.msra.mxu0 %v3936_v25  ;;  %681 = vmatprep.subr.bf16.mxu1 %v3979_v38  ;;  %s4187_s13 = scalar_lea.vmem %s89_s10, 32768  ;;  %p4192_p7 = scmp.lt.s32.totalorder %s89_s10, %s89_s10 }
  0x53   :  { %708 = vmatprep.subr.bf16.mxu0 %v3941_v27  ;;  %v127_v24 = vrot.slane %v122_v22, %v4328_v21  ;;  %v131_v25 = vrot.slane %v122_v22, %v4334_v23  ;;  %p4188_p6 = scmp.ne.s32.totalorder %s89_s10, %s4187_s13  ;;  %p4193_p8 = scmp.lt.s32.totalorder %s4187_s13, %s4187_s13 }
  0x55   :  { %247 = vmatmul.mubr.bf16.vlgmr.msra.gmra.mxu0 %v105_v30  ;;  %682 = vmatpush1.bf16.msra.mxu1 %v3984_v41  ;;  %p4194_p9 = por %p4193_p8, %p4192_p7 }
  0x56   :  { %709 = vmatpush1.bf16.msra.mxu0 %v3939_v31  ;;  %683 = vmatprep.subr.bf16.mxu1 %v3985_v42 }
  0x57   :  { %710 = vmatprep.subr.bf16.mxu0 %v3947_v32  ;;  %p4195_p10 = pnand %p4194_p9, %p4188_p6 }
  0x59   :  { %684 = vmatpush2.bf16.msra.mxu1 %v3990_v45 }
  0x5a   :  { %711 = vmatpush1.bf16.msra.mxu0 %v3945_v35  ;;  %685 = vmatprep.subr.bf16.mxu1 %v3991_v46 }
  0x5b   :  { %712 = vmatprep.subr.bf16.mxu0 %v3953_v36 }
  0x5d   :  { %686 = vmatpush2.bf16.msra.mxu1 %v3996_v48 }
  0x5e   :  { %713 = vmatpush1.bf16.msra.mxu0 %v3951_v39  ;;  %687 = vmatprep.subr.bf16.mxu1 %v3997_v50 }
  0x5f   :  { %714 = vmatprep.subr.bf16.mxu0 %v3959_v40 }
  0x61   :  { %688 = vmatpush2.bf16.msra.mxu1 %v4002_v52 }
  0x62   :  { %715 = vmatpush1.bf16.msra.mxu0 %v3957_v43  ;;  %689 = vmatprep.subr.bf16.mxu1 %v4003_v54 }
  0x63   :  { %716 = vmatprep.subr.bf16.mxu0 %v3965_v44 }
  0x65   :  { %690 = vmatpush2.bf16.msra.mxu1 %v4008_v56 }
  0x66   :  { %717 = vmatpush1.bf16.msra.mxu0 %v3963_v47  ;;  %691 = vmatprep.subr.bf16.mxu1 %v4009_v58 }
  0x67   :  { %718 = vmatprep.subr.bf16.mxu0 %v3971_v49 }
  0x69   :  { %692 = vmatpush2.bf16.msra.mxu1 %v4014_v60 }
  0x6a   :  { %719 = vmatpush1.bf16.msra.mxu0 %v3969_v51  ;;  %693 = vmatprep.subr.bf16.mxu1 %v4015_v7 }
  0x6b   :  { %720 = vmatprep.subr.bf16.mxu0 %v3977_v53 }
  0x6d   :  { %694 = vmatpush2.bf16.msra.mxu1 %v4020_v10 }
  0x6e   :  { %721 = vmatpush1.bf16.msra.mxu0 %v3975_v55  ;;  %695 = vmatprep.subr.bf16.mxu1 %v4021_v11 }
  0x6f   :  { %722 = vmatprep.subr.bf16.mxu0 %v3983_v57 }
  0x71   :  { %696 = vmatpush2.bf16.msra.mxu1 %v4026_v14 }
  0x72   :  { %723 = vmatpush1.bf16.msra.mxu0 %v3981_v59  ;;  %697 = vmatprep.subr.bf16.mxu1 %v4027_v15 }
  0x73   :  { %724 = vmatprep.subr.bf16.mxu0 %v3989_v61 }
  0x75   :  { %698 = vmatpush2.bf16.msra.mxu1 %v4032_v18 }
  0x76   :  { %725 = vmatpush2.bf16.msra.mxu0 %v3987_v62 }
  0x77   :  { %726 = vmatprep.subr.bf16.mxu0 %v3995_v63 }
  0x7a   :  { %727 = vmatpush2.bf16.msra.mxu0 %v3993_v0 }
  0x7b   :  { %728 = vmatprep.subr.bf16.mxu0 %v4001_v1 }
  0x7e   :  { %729 = vmatpush2.bf16.msra.mxu0 %v3999_v2 }
  0x7f   :  { %730 = vmatprep.subr.bf16.mxu0 %v4007_v3 }
  0x82   :  { %731 = vmatpush2.bf16.msra.mxu0 %v4005_v4 }
  0x83   :  { %732 = vmatprep.subr.bf16.mxu0 %v4013_v5 }
  0x86   :  { %733 = vmatpush2.bf16.msra.mxu0 %v4011_v6 }
  0x87   :  { %734 = vmatprep.subr.bf16.mxu0 %v4019_v8 }
  0x8a   :  { %735 = vmatpush2.bf16.msra.mxu0 %v4017_v9 }
  0x8b   :  { %736 = vmatprep.subr.bf16.mxu0 %v4025_v12 }
  0x8e   :  { %737 = vmatpush2.bf16.msra.mxu0 %v4023_v13 }
  0x8f   :  { %738 = vmatprep.subr.bf16.mxu0 %v4031_v16 }
  0x92   :  { %739 = vmatpush2.bf16.msra.mxu0 %v4029_v17 }
 0x115   :  { %v248_v26 = vpop.f32.mrf.mxu0 }
 0x116   :  { %v249_v27 = vadd.f32 %v248_v26, %v127_v24 }
 0x117   :  { %v250_v28 = vpop.f32.mrf.mxu0 }
 0x118   :  { %v255_v29 = vmul.f32 0.2, %v249_v27  ;;  %v251_v30 = vadd.f32 %v250_v28, %v131_v25 }
 0x119   :  { %v252_v31 = vpop.f32.mrf.mxu0 }
 0x11a   :  { %v256_v32 = vmul.f32 0.2, %v251_v30  ;;  %v257_v33 = vmax.f32 %v249_v27, %v255_v29 }
 0x11b   :  { %v253_v34 = vpop.f32.mrf.mxu0 }
 0x11c   :  { %v258_v35 = vmax.f32 %v251_v30, %v256_v32  ;;  %v259_v37 = vpack.c.bf16 %v257_v33, %v257_v33 }
 0x11e   :  { %v260_v36 = vpack.c.bf16 %v258_v35, %v258_v35 }
 0x120   :  { %699 = vmatprep.mubr.bf16.mxu1 %v260_v36  ;;  %740 = vmatprep.mubr.bf16.mxu0 %v260_v36 }
 0x121   :  { %700 = vmatmul.mubr.bf16.vlgmr.msra.gmra.mxu1 %v259_v37  ;;  %741 = vmatmul.mubr.bf16.vlgmr.msra.gmra.mxu0 %v259_v37 }
 0x122   :  { %4198 = shalt.err (!%p4195_p10)  }
 0x123   :  { %91 = dma.hbm_to_vmem [thread:$0]  %s4418_s5, 32768, %s89_s10, [#allocation4] }
 0x124   :  { %s4207_s16 = scalar_lea.vmem %s101_s12, 8192  ;;  %p4212_p12 = scmp.lt.s32.totalorder %s101_s12, %s101_s12 }
 0x125   :  { %p4208_p11 = scmp.ne.s32.totalorder %s101_s12, %s4207_s16  ;;  %p4213_p13 = scmp.lt.s32.totalorder %s4207_s16, %s4207_s16 }
 0x127   :  { %p4214_p0 = por %p4213_p13, %p4212_p12 }
 0x129   :  { %p4215_p1 = pnand %p4214_p0, %p4208_p11 }
 0x12b   :  { %4218 = shalt.err (!%p4215_p1)  }
 0x12c   :  { %103 = dma.hbm_to_vmem [thread:$0]  %s4420_s7, 8192, %s101_s12, [#allocation4 + $0x1]  ;;  %v337_v38 = vsub.s32 2, %v4325_v20  ;;  %v325_v39 = vld [vmem:[#allocation11] sm:$0xf]  ;;  %v341_v40 = vsub.s32 3, %v4325_v20 }
 0x12d   :  { %v330_v41 = vrot.slane %v325_v39, %v4328_v21  ;;  %v334_v43 = vrot.slane %v325_v39, %v4334_v23 }
 0x12e   :  { %v338_v42 = vrot.slane %v325_v39, %v337_v38  ;;  %v342_v44 = vrot.slane %v325_v39, %v341_v40 }
 0x1e1   :  { %v701_v45 = vpop.f32.mrf.mxu1  ;;  %v742_v46 = vpop.f32.mrf.mxu0 }
 0x1e2   :  { %v702_v47 = vadd.f32 %v701_v45, %v330_v41  ;;  %v743_v48 = vadd.f32 %v742_v46, %v338_v42 }
 0x1e3   :  { %v703_v49 = vpop.f32.mrf.mxu1  ;;  %v744_v50 = vpop.f32.mrf.mxu0 }
 0x1e4   :  { %v749_v51 = vmul.f32 0.2, %v702_v47  ;;  %v751_v52 = vmul.f32 0.2, %v743_v48  ;;  %v704_v53 = vadd.f32 %v703_v49, %v334_v43  ;;  %v745_v54 = vadd.f32 %v744_v50, %v342_v44 }
 0x1e5   :  { %v705_v55 = vpop.f32.mrf.mxu1  ;;  %v746_v56 = vpop.f32.mrf.mxu0 }
 0x1e6   :  { %v4352_v57 = vmax.f32 %v702_v47, %v749_v51  ;;  %v4354_v58 = vmax.f32 %v743_v48, %v751_v52  ;;  %v750_v59 = vmul.f32 0.2, %v704_v53  ;;  %v752_v60 = vmul.f32 0.2, %v745_v54 }
 0x1e7   :  { %v706_v61 = vpop.f32.mrf.mxu1  ;;  %v747_v62 = vpop.f32.mrf.mxu0 }
 0x1e8   :  { %v754_v63 = vmax.f32 %v704_v53, %v750_v59  ;;  %v756_v0 = vmax.f32 %v745_v54, %v752_v60 }
 0x1e9   :  { %4245 = dma.done.wait [#allocation4], 32768 }
 0x1ea   :  { %4246 = vsyncadd [#allocation4], 4294934528 }
 0x1eb   :  { %4247 = dma.done.wait [#allocation4 + $0x1], 8192 }
 0x1ec   :  { %4248 = vsyncadd [#allocation4 + $0x1], 4294959104  ;;  %v4356_v1 = vpack.c.bf16 %v754_v63, %v754_v63  ;;  %v4358_v2 = vpack.c.bf16 %v756_v0, %v756_v0  ;;  %v821_v3 = vld [vmem:[#allocation2 + $0x1c0] sm:$0xff] }
 0x1ed   :  { %v825_v4 = vld [vmem:[#allocation2 + $0x1e0] sm:$0xff] }
 0x1ee   :  { %2507 = vmatprep.mubr.bf16.mxu1 %v4356_v1  ;;  %2548 = vmatprep.mubr.bf16.mxu0 %v4358_v2  ;;  %v949_v5 = vld [vmem:[#allocation2 + $0x5c0] sm:$0xff]  ;;  %v3547_v6 = vcombine.high %v821_v3, %v825_v4  ;;  %v3546_v8 = vcombine.low %v821_v3, %v825_v4 }
 0x1ef   :  { %v953_v7 = vld [vmem:[#allocation2 + $0x5e0] sm:$0xff] }
 0x1f0   :  { %v813_v9 = vld [vmem:[#allocation2 + $0x180] sm:$0xff]  ;;  %v3675_v11 = vcombine.high %v949_v5, %v953_v7  ;;  %v3674_v12 = vcombine.low %v949_v5, %v953_v7  ;;  %2475 = vmatprep.subr.bf16.mxu1 %v3547_v6 }
 0x1f1   :  { %v817_v10 = vld [vmem:[#allocation2 + $0x1a0] sm:$0xff]  ;;  %2476 = vmatpush1.bf16.msra.mxu1 %v3546_v8 }
 0x1f2   :  { %v3539_v13 = vcombine.high %v813_v9, %v817_v10  ;;  %v941_v14 = vld [vmem:[#allocation2 + $0x580] sm:$0xff]  ;;  %2516 = vmatprep.subr.bf16.mxu0 %v3675_v11  ;;  %v3538_v24 = vcombine.low %v813_v9, %v817_v10 }
 0x1f3   :  { %v945_v15 = vld [vmem:[#allocation2 + $0x5a0] sm:$0xff]  ;;  %2517 = vmatpush1.bf16.msra.mxu0 %v3674_v12 }
 0x1f4   :  { %v805_v16 = vld [vmem:[#allocation2 + $0x140] sm:$0xff]  ;;  %v3667_v17 = vcombine.high %v941_v14, %v945_v15  ;;  %2477 = vmatprep.subr.bf16.mxu1 %v3539_v13  ;;  %v3666_v25 = vcombine.low %v941_v14, %v945_v15 }
 0x1f5   :  { %v809_v18 = vld [vmem:[#allocation2 + $0x160] sm:$0xff]  ;;  %2478 = vmatpush1.bf16.msra.mxu1 %v3538_v24 }
 0x1f6   :  { %v933_v19 = vld [vmem:[#allocation2 + $0x540] sm:$0xff]  ;;  %v3531_v26 = vcombine.high %v805_v16, %v809_v18  ;;  %2518 = vmatprep.subr.bf16.mxu0 %v3667_v17  ;;  %v3530_v32 = vcombine.low %v805_v16, %v809_v18 }
 0x1f7   :  { %v937_v22 = vld [vmem:[#allocation2 + $0x560] sm:$0xff]  ;;  %2519 = vmatpush1.bf16.msra.mxu0 %v3666_v25 }
 0x1f8   :  { %v3659_v27 = vcombine.high %v933_v19, %v937_v22  ;;  %v797_v28 = vld [vmem:[#allocation2 + $0x100] sm:$0xff]  ;;  %2479 = vmatprep.subr.bf16.mxu1 %v3531_v26  ;;  %v3658_v33 = vcombine.low %v933_v19, %v937_v22 }
 0x1f9   :  { %v801_v29 = vld [vmem:[#allocation2 + $0x120] sm:$0xff]  ;;  %2480 = vmatpush1.bf16.msra.mxu1 %v3530_v32 }
 0x1fa   :  { %v925_v30 = vld [vmem:[#allocation2 + $0x500] sm:$0xff]  ;;  %v3523_v34 = vcombine.high %v797_v28, %v801_v29  ;;  %2520 = vmatprep.subr.bf16.mxu0 %v3659_v27  ;;  %v3522_v42 = vcombine.low %v797_v28, %v801_v29 }
 0x1fb   :  { %v929_v31 = vld [vmem:[#allocation2 + $0x520] sm:$0xff]  ;;  %2521 = vmatpush1.bf16.msra.mxu0 %v3658_v33 }
 0x1fc   :  { %v3651_v35 = vcombine.high %v925_v30, %v929_v31  ;;  %v789_v36 = vld [vmem:[#allocation2 + $0xc0] sm:$0xff]  ;;  %2481 = vmatprep.subr.bf16.mxu1 %v3523_v34  ;;  %v3650_v43 = vcombine.low %v925_v30, %v929_v31 }
 0x1fd   :  { %v793_v37 = vld [vmem:[#allocation2 + $0xe0] sm:$0xff]  ;;  %2482 = vmatpush1.bf16.msra.mxu1 %v3522_v42 }
 0x1fe   :  { %v917_v39 = vld [vmem:[#allocation2 + $0x4c0] sm:$0xff]  ;;  %v3515_v44 = vcombine.high %v789_v36, %v793_v37  ;;  %2522 = vmatprep.subr.bf16.mxu0 %v3651_v35  ;;  %v3514_v50 = vcombine.low %v789_v36, %v793_v37 }
 0x1ff   :  { %v921_v41 = vld [vmem:[#allocation2 + $0x4e0] sm:$0xff]  ;;  %2523 = vmatpush1.bf16.msra.mxu0 %v3650_v43 }
 0x200   :  { %v3643_v45 = vcombine.high %v917_v39, %v921_v41  ;;  %v781_v46 = vld [vmem:[#allocation2 + $0x80] sm:$0xff]  ;;  %2483 = vmatprep.subr.bf16.mxu1 %v3515_v44  ;;  %v3642_v51 = vcombine.low %v917_v39, %v921_v41 }
 0x201   :  { %v785_v47 = vld [vmem:[#allocation2 + $0xa0] sm:$0xff]  ;;  %2484 = vmatpush1.bf16.msra.mxu1 %v3514_v50 }
 0x202   :  { %v909_v48 = vld [vmem:[#allocation2 + $0x480] sm:$0xff]  ;;  %v3507_v52 = vcombine.high %v781_v46, %v785_v47  ;;  %2524 = vmatprep.subr.bf16.mxu0 %v3643_v45  ;;  %v3506_v60 = vcombine.low %v781_v46, %v785_v47 }
 0x203   :  { %v913_v49 = vld [vmem:[#allocation2 + $0x4a0] sm:$0xff]  ;;  %2525 = vmatpush1.bf16.msra.mxu0 %v3642_v51 }
 0x204   :  { %v3635_v53 = vcombine.high %v909_v48, %v913_v49  ;;  %v773_v54 = vld [vmem:[#allocation2 + $0x40] sm:$0xff]  ;;  %2485 = vmatprep.subr.bf16.mxu1 %v3507_v52  ;;  %v3634_v61 = vcombine.low %v909_v48, %v913_v49 }
 0x205   :  { %v777_v55 = vld [vmem:[#allocation2 + $0x60] sm:$0xff]  ;;  %2486 = vmatpush1.bf16.msra.mxu1 %v3506_v60 }
 0x206   :  { %v901_v56 = vld [vmem:[#allocation2 + $0x440] sm:$0xff]  ;;  %v3499_v62 = vcombine.high %v773_v54, %v777_v55  ;;  %2526 = vmatprep.subr.bf16.mxu0 %v3635_v53  ;;  %v3498_v6 = vcombine.low %v773_v54, %v777_v55 }
 0x207   :  { %v905_v59 = vld [vmem:[#allocation2 + $0x460] sm:$0xff]  ;;  %2527 = vmatpush1.bf16.msra.mxu0 %v3634_v61 }
 0x208   :  { %v3627_v63 = vcombine.high %v901_v56, %v905_v59  ;;  %v765_v0 = vld [vmem:[#allocation2] sm:$0xff]  ;;  %2487 = vmatprep.subr.bf16.mxu1 %v3499_v62  ;;  %v3626_v7 = vcombine.low %v901_v56, %v905_v59 }
 0x209   :  { %v769_v3 = vld [vmem:[#allocation2 + $0x20] sm:$0xff]  ;;  %2488 = vmatpush1.bf16.msra.mxu1 %v3498_v6 }
 0x20a   :  { %v893_v4 = vld [vmem:[#allocation2 + $0x400] sm:$0xff]  ;;  %v3491_v8 = vcombine.high %v765_v0, %v769_v3  ;;  %2528 = vmatprep.subr.bf16.mxu0 %v3627_v63  ;;  %v3490_v14 = vcombine.low %v765_v0, %v769_v3 }
 0x20b   :  { %v897_v5 = vld [vmem:[#allocation2 + $0x420] sm:$0xff]  ;;  %2529 = vmatpush1.bf16.msra.mxu0 %v3626_v7 }
 0x20c   :  { %v3619_v9 = vcombine.high %v893_v4, %v897_v5  ;;  %v885_v10 = vld [vmem:[#allocation2 + $0x3c0] sm:$0xff]  ;;  %2489 = vmatprep.subr.bf16.mxu1 %v3491_v8  ;;  %v3618_v15 = vcombine.low %v893_v4, %v897_v5 }
 0x20d   :  { %v889_v11 = vld [vmem:[#allocation2 + $0x3e0] sm:$0xff]  ;;  %2490 = vmatpush1.bf16.msra.mxu1 %v3490_v14 }
 0x20e   :  { %v1013_v12 = vld [vmem:[#allocation2 + $0x7c0] sm:$0xff]  ;;  %v3611_v16 = vcombine.high %v885_v10, %v889_v11  ;;  %2530 = vmatprep.subr.bf16.mxu0 %v3619_v9  ;;  %v3610_v25 = vcombine.low %v885_v10, %v889_v11 }
 0x20f   :  { %v1017_v13 = vld [vmem:[#allocation2 + $0x7e0] sm:$0xff]  ;;  %2531 = vmatpush1.bf16.msra.mxu0 %v3618_v15 }
 0x210   :  { %v3739_v17 = vcombine.high %v1013_v12, %v1017_v13  ;;  %v877_v18 = vld [vmem:[#allocation2 + $0x380] sm:$0xff]  ;;  %2491 = vmatprep.subr.bf16.mxu1 %v3611_v16  ;;  %v3738_v26 = vcombine.low %v1013_v12, %v1017_v13 }
 0x211   :  { %v881_v19 = vld [vmem:[#allocation2 + $0x3a0] sm:$0xff]  ;;  %2492 = vmatpush2.bf16.msra.mxu1 %v3610_v25  ;;  %v954_v25 = vld [vmem:[#allocation2 + $0x5e8] sm:$0xff] }
 0x212   :  { %v1005_v22 = vld [vmem:[#allocation2 + $0x780] sm:$0xff]  ;;  %v3603_v27 = vcombine.high %v877_v18, %v881_v19  ;;  %2532 = vmatprep.subr.bf16.mxu0 %v3739_v17  ;;  %v3602_v33 = vcombine.low %v877_v18, %v881_v19  ;;  %v822_v19 = vld [vmem:[#allocation2 + $0x1c8] sm:$0xff] }
 0x213   :  { %v1009_v24 = vld [vmem:[#allocation2 + $0x7a0] sm:$0xff]  ;;  %2533 = vmatpush2.bf16.msra.mxu0 %v3738_v26 }
 0x214   :  { %v3731_v28 = vcombine.high %v1005_v22, %v1009_v24  ;;  %v869_v29 = vld [vmem:[#allocation2 + $0x340] sm:$0xff]  ;;  %2493 = vmatprep.subr.bf16.mxu1 %v3603_v27  ;;  %v3730_v34 = vcombine.low %v1005_v22, %v1009_v24  ;;  %v826_v22 = vld [vmem:[#allocation2 + $0x1e8] sm:$0xff] }
 0x215   :  { %v873_v30 = vld [vmem:[#allocation2 + $0x360] sm:$0xff]  ;;  %2494 = vmatpush2.bf16.msra.mxu1 %v3602_v33  ;;  %v950_v24 = vld [vmem:[#allocation2 + $0x5c8] sm:$0xff] }
 0x216   :  { %v997_v31 = vld [vmem:[#allocation2 + $0x740] sm:$0xff]  ;;  %v3595_v35 = vcombine.high %v869_v29, %v873_v30  ;;  %2534 = vmatprep.subr.bf16.mxu0 %v3731_v28  ;;  %v3594_v43 = vcombine.low %v869_v29, %v873_v30  ;;  %v3549_v28 = vcombine.high %v822_v19, %v826_v22  ;;  %v3677_v29 = vcombine.high %v950_v24, %v954_v25  ;;  %v814_v30 = vld [vmem:[#allocation2 + $0x188] sm:$0xff] }
 0x217   :  { %v1001_v32 = vld [vmem:[#allocation2 + $0x760] sm:$0xff]  ;;  %2535 = vmatpush2.bf16.msra.mxu0 %v3730_v34  ;;  %v942_v33 = vld [vmem:[#allocation2 + $0x588] sm:$0xff] }
 0x218   :  { %v3723_v36 = vcombine.high %v997_v31, %v1001_v32  ;;  %v861_v37 = vld [vmem:[#allocation2 + $0x300] sm:$0xff]  ;;  %2495 = vmatprep.subr.bf16.mxu1 %v3595_v35  ;;  %v3722_v44 = vcombine.low %v997_v31, %v1001_v32  ;;  %v818_v31 = vld [vmem:[#allocation2 + $0x1a8] sm:$0xff]  ;;  %v4364_v32 = vpack.c.bf16 %v4352_v57, %v4352_v57  ;;  %v4368_v35 = vpack.c.bf16 %v4354_v58, %v4354_v58 }
 0x219   :  { %v865_v39 = vld [vmem:[#allocation2 + $0x320] sm:$0xff]  ;;  %2496 = vmatpush2.bf16.msra.mxu1 %v3594_v43  ;;  %v946_v34 = vld [vmem:[#allocation2 + $0x5a8] sm:$0xff]  ;;  %v3540_v57 = vcombine.low %v814_v30, %v818_v31 }
 0x21a   :  { %v989_v41 = vld [vmem:[#allocation2 + $0x700] sm:$0xff]  ;;  %v3587_v45 = vcombine.high %v861_v37, %v865_v39  ;;  %2536 = vmatprep.subr.bf16.mxu0 %v3723_v36  ;;  %v3586_v51 = vcombine.low %v861_v37, %v865_v39  ;;  %v3548_v36 = vcombine.low %v822_v19, %v826_v22  ;;  %v3676_v37 = vcombine.low %v950_v24, %v954_v25  ;;  %v934_v43 = vld [vmem:[#allocation2 + $0x548] sm:$0xff] }
 0x21b   :  { %v993_v42 = vld [vmem:[#allocation2 + $0x720] sm:$0xff]  ;;  %2537 = vmatpush2.bf16.msra.mxu0 %v3722_v44  ;;  %v3541_v39 = vcombine.high %v814_v30, %v818_v31  ;;  %v3669_v44 = vcombine.high %v942_v33, %v946_v34  ;;  %v3668_v58 = vcombine.low %v942_v33, %v946_v34  ;;  %v766_v19 = vld [vmem:[#allocation2 + $0x8] sm:$0xff] }
 0x21c   :  { %v3715_v46 = vcombine.high %v989_v41, %v993_v42  ;;  %v853_v47 = vld [vmem:[#allocation2 + $0x2c0] sm:$0xff]  ;;  %2497 = vmatprep.subr.bf16.mxu1 %v3587_v45  ;;  %v3714_v52 = vcombine.low %v989_v41, %v993_v42  ;;  %v806_v41 = vld [vmem:[#allocation2 + $0x148] sm:$0xff] }
 0x21d   :  { %v857_v48 = vld [vmem:[#allocation2 + $0x2e0] sm:$0xff]  ;;  %2498 = vmatpush2.bf16.msra.mxu1 %v3586_v51  ;;  %v810_v42 = vld [vmem:[#allocation2 + $0x168] sm:$0xff] }
 0x21e   :  { %v981_v49 = vld [vmem:[#allocation2 + $0x6c0] sm:$0xff]  ;;  %v3579_v53 = vcombine.high %v853_v47, %v857_v48  ;;  %2538 = vmatprep.subr.bf16.mxu0 %v3715_v46  ;;  %v3578_v61 = vcombine.low %v853_v47, %v857_v48  ;;  %v938_v45 = vld [vmem:[#allocation2 + $0x568] sm:$0xff]  ;;  %v3533_v46 = vcombine.high %v806_v41, %v810_v42 }
 0x21f   :  { %v985_v50 = vld [vmem:[#allocation2 + $0x6e0] sm:$0xff]  ;;  %2539 = vmatpush2.bf16.msra.mxu0 %v3714_v52  ;;  %v798_v47 = vld [vmem:[#allocation2 + $0x108] sm:$0xff]  ;;  %v3532_v52 = vcombine.low %v806_v41, %v810_v42 }
 0x220   :  { %v3707_v54 = vcombine.high %v981_v49, %v985_v50  ;;  %v845_v55 = vld [vmem:[#allocation2 + $0x280] sm:$0xff]  ;;  %2499 = vmatprep.subr.bf16.mxu1 %v3579_v53  ;;  %v3706_v62 = vcombine.low %v981_v49, %v985_v50  ;;  %v802_v48 = vld [vmem:[#allocation2 + $0x128] sm:$0xff]  ;;  %v3661_v50 = vcombine.high %v934_v43, %v938_v45  ;;  %v3660_v53 = vcombine.low %v934_v43, %v938_v45 }
 0x221   :  { %v849_v56 = vld [vmem:[#allocation2 + $0x2a0] sm:$0xff]  ;;  %2500 = vmatpush2.bf16.msra.mxu1 %v3578_v61  ;;  %v926_v49 = vld [vmem:[#allocation2 + $0x508] sm:$0xff] }
 0x222   :  { %v973_v59 = vld [vmem:[#allocation2 + $0x680] sm:$0xff]  ;;  %v3571_v63 = vcombine.high %v845_v55, %v849_v56  ;;  %2540 = vmatprep.subr.bf16.mxu0 %v3707_v54  ;;  %v3570_v7 = vcombine.low %v845_v55, %v849_v56  ;;  %v930_v51 = vld [vmem:[#allocation2 + $0x528] sm:$0xff]  ;;  %v3525_v54 = vcombine.high %v798_v47, %v802_v48 }
 0x223   :  { %v977_v60 = vld [vmem:[#allocation2 + $0x6a0] sm:$0xff]  ;;  %2541 = vmatpush2.bf16.msra.mxu0 %v3706_v62  ;;  %v790_v55 = vld [vmem:[#allocation2 + $0xc8] sm:$0xff]  ;;  %v3524_v62 = vcombine.low %v798_v47, %v802_v48 }
 0x224   :  { %v3699_v0 = vcombine.high %v973_v59, %v977_v60  ;;  %v837_v3 = vld [vmem:[#allocation2 + $0x240] sm:$0xff]  ;;  %2501 = vmatprep.subr.bf16.mxu1 %v3571_v63  ;;  %v3698_v8 = vcombine.low %v973_v59, %v977_v60  ;;  %v794_v56 = vld [vmem:[#allocation2 + $0xe8] sm:$0xff]  ;;  %v3653_v60 = vcombine.high %v926_v49, %v930_v51  ;;  %v3652_v63 = vcombine.low %v926_v49, %v930_v51 }
 0x225   :  { %v841_v4 = vld [vmem:[#allocation2 + $0x260] sm:$0xff]  ;;  %2502 = vmatpush2.bf16.msra.mxu1 %v3570_v7  ;;  %v918_v59 = vld [vmem:[#allocation2 + $0x4c8] sm:$0xff] }
 0x226   :  { %v965_v5 = vld [vmem:[#allocation2 + $0x640] sm:$0xff]  ;;  %v3563_v9 = vcombine.high %v837_v3, %v841_v4  ;;  %2542 = vmatprep.subr.bf16.mxu0 %v3699_v0  ;;  %v3562_v15 = vcombine.low %v837_v3, %v841_v4  ;;  %v922_v61 = vld [vmem:[#allocation2 + $0x4e8] sm:$0xff]  ;;  %v3517_v0 = vcombine.high %v790_v55, %v794_v56 }
 0x227   :  { %v969_v6 = vld [vmem:[#allocation2 + $0x660] sm:$0xff]  ;;  %2543 = vmatpush2.bf16.msra.mxu0 %v3698_v8  ;;  %v782_v3 = vld [vmem:[#allocation2 + $0x88] sm:$0xff]  ;;  %v3516_v8 = vcombine.low %v790_v55, %v794_v56 }
 0x228   :  { %v3691_v10 = vcombine.high %v965_v5, %v969_v6  ;;  %v829_v11 = vld [vmem:[#allocation2 + $0x200] sm:$0xff]  ;;  %2503 = vmatprep.subr.bf16.mxu1 %v3563_v9  ;;  %v3690_v16 = vcombine.low %v965_v5, %v969_v6  ;;  %v786_v4 = vld [vmem:[#allocation2 + $0xa8] sm:$0xff]  ;;  %v3645_v6 = vcombine.high %v918_v59, %v922_v61  ;;  %v3644_v9 = vcombine.low %v918_v59, %v922_v61 }
 0x229   :  { %v833_v12 = vld [vmem:[#allocation2 + $0x220] sm:$0xff]  ;;  %2504 = vmatpush2.bf16.msra.mxu1 %v3562_v15  ;;  %v910_v5 = vld [vmem:[#allocation2 + $0x488] sm:$0xff] }
 0x22a   :  { %v957_v13 = vld [vmem:[#allocation2 + $0x600] sm:$0xff]  ;;  %v3555_v17 = vcombine.high %v829_v11, %v833_v12  ;;  %2544 = vmatprep.subr.bf16.mxu0 %v3691_v10  ;;  %v3554_v26 = vcombine.low %v829_v11, %v833_v12  ;;  %v914_v7 = vld [vmem:[#allocation2 + $0x4a8] sm:$0xff]  ;;  %v3509_v10 = vcombine.high %v782_v3, %v786_v4 }
 0x22b   :  { %v961_v14 = vld [vmem:[#allocation2 + $0x620] sm:$0xff]  ;;  %2545 = vmatpush2.bf16.msra.mxu0 %v3690_v16  ;;  %v774_v11 = vld [vmem:[#allocation2 + $0x48] sm:$0xff]  ;;  %v3508_v16 = vcombine.low %v782_v3, %v786_v4 }
 0x22c   :  { %v3683_v18 = vcombine.high %v957_v13, %v961_v14  ;;  %2505 = vmatprep.subr.bf16.mxu1 %v3555_v17  ;;  %v3682_v27 = vcombine.low %v957_v13, %v961_v14  ;;  %v778_v12 = vld [vmem:[#allocation2 + $0x68] sm:$0xff]  ;;  %v3637_v14 = vcombine.high %v910_v5, %v914_v7  ;;  %v3636_v17 = vcombine.low %v910_v5, %v914_v7 }
 0x22d   :  { %2506 = vmatpush2.bf16.msra.mxu1 %v3554_v26  ;;  %v902_v13 = vld [vmem:[#allocation2 + $0x448] sm:$0xff] }
 0x22e   :  { %2546 = vmatprep.subr.bf16.mxu0 %v3683_v18  ;;  %2557 = vmatprep.subr.bf16.mxu1 %v3549_v28  ;;  %v906_v15 = vld [vmem:[#allocation2 + $0x468] sm:$0xff]  ;;  %v3501_v18 = vcombine.high %v774_v11, %v778_v12 }
 0x22f   :  { %2547 = vmatpush2.bf16.msra.mxu0 %v3682_v27  ;;  %v770_v22 = vld [vmem:[#allocation2 + $0x28] sm:$0xff]  ;;  %v3629_v25 = vcombine.high %v902_v13, %v906_v15  ;;  %v3500_v27 = vcombine.low %v774_v11, %v778_v12  ;;  %v3628_v28 = vcombine.low %v902_v13, %v906_v15 }
 0x230   :  { %2598 = vmatprep.subr.bf16.mxu0 %v3677_v29  ;;  %2508 = vmatmul.mubr.bf16.vlgmr.msra.gmra.mxu1 %v4364_v32  ;;  %v894_v24 = vld [vmem:[#allocation2 + $0x408] sm:$0xff]  ;;  %v3493_v29 = vcombine.high %v766_v19, %v770_v22 }
 0x231   :  { %2558 = vmatpush1.bf16.msra.mxu1 %v3548_v36  ;;  %2589 = vmatprep.mubr.bf16.mxu1 %v4356_v1  ;;  %v898_v26 = vld [vmem:[#allocation2 + $0x428] sm:$0xff] }
 0x232   :  { %2549 = vmatmul.mubr.bf16.vlgmr.msra.gmra.mxu0 %v4368_v35  ;;  %2559 = vmatprep.subr.bf16.mxu1 %v3541_v39  ;;  %v886_v30 = vld [vmem:[#allocation2 + $0x3c8] sm:$0xff]  ;;  %v3621_v34 = vcombine.high %v894_v24, %v898_v26  ;;  %v3620_v39 = vcombine.low %v894_v24, %v898_v26 }
 0x233   :  { %2599 = vmatpush1.bf16.msra.mxu0 %v3676_v37  ;;  %2630 = vmatprep.mubr.bf16.mxu0 %v4358_v2  ;;  %v890_v31 = vld [vmem:[#allocation2 + $0x3e8] sm:$0xff]  ;;  %v3492_v37 = vcombine.low %v766_v19, %v770_v22 }
 0x234   :  { %2600 = vmatprep.subr.bf16.mxu0 %v3669_v44  ;;  %v1014_v33 = vld [vmem:[#allocation2 + $0x7c8] sm:$0xff]  ;;  %v3613_v41 = vcombine.high %v886_v30, %v890_v31 }
 0x235   :  { %2560 = vmatpush1.bf16.msra.mxu1 %v3540_v57  ;;  %v1018_v36 = vld [vmem:[#allocation2 + $0x7e8] sm:$0xff] }
 0x236   :  { %2561 = vmatprep.subr.bf16.mxu1 %v3533_v46  ;;  %v878_v42 = vld [vmem:[#allocation2 + $0x388] sm:$0xff]  ;;  %v3741_v45 = vcombine.high %v1014_v33, %v1018_v36  ;;  %v3740_v46 = vcombine.low %v1014_v33, %v1018_v36 }
 0x237   :  { %2601 = vmatpush1.bf16.msra.mxu0 %v3668_v58  ;;  %v882_v43 = vld [vmem:[#allocation2 + $0x3a8] sm:$0xff]  ;;  %v3612_v58 = vcombine.low %v886_v30, %v890_v31 }
 0x238   :  { %2602 = vmatprep.subr.bf16.mxu0 %v3661_v50  ;;  %v1006_v44 = vld [vmem:[#allocation2 + $0x788] sm:$0xff]  ;;  %v3605_v47 = vcombine.high %v878_v42, %v882_v43 }
 0x239   :  { %2562 = vmatpush1.bf16.msra.mxu1 %v3532_v52  ;;  %v1010_v57 = vld [vmem:[#allocation2 + $0x7a8] sm:$0xff] }
 0x23a   :  { %2563 = vmatprep.subr.bf16.mxu1 %v3525_v54  ;;  %v870_v48 = vld [vmem:[#allocation2 + $0x348] sm:$0xff]  ;;  %v3733_v51 = vcombine.high %v1006_v44, %v1010_v57  ;;  %v3732_v54 = vcombine.low %v1006_v44, %v1010_v57  ;;  %v827_v44 = vld [vmem:[#allocation2 + $0x1f0] sm:$0xff] }
 0x23b   :  { %2603 = vmatpush1.bf16.msra.mxu0 %v3660_v53  ;;  %v874_v49 = vld [vmem:[#allocation2 + $0x368] sm:$0xff]  ;;  %v3604_v53 = vcombine.low %v878_v42, %v882_v43  ;;  %v823_v43 = vld [vmem:[#allocation2 + $0x1d0] sm:$0xff] }
 0x23c   :  { %2604 = vmatprep.subr.bf16.mxu0 %v3653_v60  ;;  %v998_v50 = vld [vmem:[#allocation2 + $0x748] sm:$0xff]  ;;  %v3597_v55 = vcombine.high %v870_v48, %v874_v49 }
 0x23d   :  { %2564 = vmatpush1.bf16.msra.mxu1 %v3524_v62  ;;  %v1002_v52 = vld [vmem:[#allocation2 + $0x768] sm:$0xff] }
 0x23e   :  { %2565 = vmatprep.subr.bf16.mxu1 %v3517_v0  ;;  %v862_v56 = vld [vmem:[#allocation2 + $0x308] sm:$0xff]  ;;  %v3725_v61 = vcombine.high %v998_v50, %v1002_v52  ;;  %v3724_v0 = vcombine.low %v998_v50, %v1002_v52  ;;  %v819_v50 = vld [vmem:[#allocation2 + $0x1b0] sm:$0xff] }
 0x23f   :  { %2605 = vmatpush1.bf16.msra.mxu0 %v3652_v63  ;;  %v866_v59 = vld [vmem:[#allocation2 + $0x328] sm:$0xff]  ;;  %v3596_v63 = vcombine.low %v870_v48, %v874_v49  ;;  %v3551_v48 = vcombine.high %v823_v43, %v827_v44  ;;  %v815_v49 = vld [vmem:[#allocation2 + $0x190] sm:$0xff] }
 0x240   :  { %2606 = vmatprep.subr.bf16.mxu0 %v3645_v6  ;;  %v990_v60 = vld [vmem:[#allocation2 + $0x708] sm:$0xff]  ;;  %v3589_v3 = vcombine.high %v862_v56, %v866_v59 }
 0x241   :  { %2566 = vmatpush1.bf16.msra.mxu1 %v3516_v8  ;;  %v994_v62 = vld [vmem:[#allocation2 + $0x728] sm:$0xff] }
 0x242   :  { %2567 = vmatprep.subr.bf16.mxu1 %v3509_v10  ;;  %v854_v4 = vld [vmem:[#allocation2 + $0x2c8] sm:$0xff]  ;;  %v3717_v7 = vcombine.high %v990_v60, %v994_v62  ;;  %v3716_v10 = vcombine.low %v990_v60, %v994_v62  ;;  %v807_v60 = vld [vmem:[#allocation2 + $0x150] sm:$0xff] }
 0x243   :  { %2607 = vmatpush1.bf16.msra.mxu0 %v3644_v9  ;;  %v858_v5 = vld [vmem:[#allocation2 + $0x2e8] sm:$0xff]  ;;  %v3588_v9 = vcombine.low %v862_v56, %v866_v59  ;;  %v3543_v56 = vcombine.high %v815_v49, %v819_v50  ;;  %v935_v62 = vld [vmem:[#allocation2 + $0x550] sm:$0xff] }
 0x244   :  { %2608 = vmatprep.subr.bf16.mxu0 %v3637_v14  ;;  %v982_v6 = vld [vmem:[#allocation2 + $0x6c8] sm:$0xff]  ;;  %v3581_v11 = vcombine.high %v854_v4, %v858_v5 }
 0x245   :  { %2568 = vmatpush1.bf16.msra.mxu1 %v3508_v16  ;;  %v986_v8 = vld [vmem:[#allocation2 + $0x6e8] sm:$0xff] }
 0x246   :  { %2569 = vmatprep.subr.bf16.mxu1 %v3501_v18  ;;  %v846_v12 = vld [vmem:[#allocation2 + $0x288] sm:$0xff]  ;;  %v3709_v15 = vcombine.high %v982_v6, %v986_v8  ;;  %v3708_v18 = vcombine.low %v982_v6, %v986_v8  ;;  %v799_v6 = vld [vmem:[#allocation2 + $0x110] sm:$0xff] }
 0x247   :  { %2609 = vmatpush1.bf16.msra.mxu0 %v3636_v17  ;;  %v850_v13 = vld [vmem:[#allocation2 + $0x2a8] sm:$0xff]  ;;  %v3580_v17 = vcombine.low %v854_v4, %v858_v5  ;;  %v927_v8 = vld [vmem:[#allocation2 + $0x510] sm:$0xff] }
 0x248   :  { %2610 = vmatprep.subr.bf16.mxu0 %v3629_v25  ;;  %v974_v14 = vld [vmem:[#allocation2 + $0x688] sm:$0xff]  ;;  %v3573_v19 = vcombine.high %v846_v12, %v850_v13 }
 0x249   :  { %2570 = vmatpush1.bf16.msra.mxu1 %v3500_v27  ;;  %v978_v16 = vld [vmem:[#allocation2 + $0x6a8] sm:$0xff] }
 0x24a   :  { %2571 = vmatprep.subr.bf16.mxu1 %v3493_v29  ;;  %v838_v22 = vld [vmem:[#allocation2 + $0x248] sm:$0xff]  ;;  %v3701_v26 = vcombine.high %v974_v14, %v978_v16  ;;  %v3700_v29 = vcombine.low %v974_v14, %v978_v16  ;;  %v791_v14 = vld [vmem:[#allocation2 + $0xd0] sm:$0xff] }
 0x24b   :  { %2611 = vmatpush1.bf16.msra.mxu0 %v3628_v28  ;;  %v842_v24 = vld [vmem:[#allocation2 + $0x268] sm:$0xff]  ;;  %v3572_v28 = vcombine.low %v846_v12, %v850_v13  ;;  %v919_v16 = vld [vmem:[#allocation2 + $0x4d0] sm:$0xff] }
 0x24c   :  { %2612 = vmatprep.subr.bf16.mxu0 %v3621_v34  ;;  %v966_v25 = vld [vmem:[#allocation2 + $0x648] sm:$0xff]  ;;  %v3565_v30 = vcombine.high %v838_v22, %v842_v24 }
 0x24d   :  { %2572 = vmatpush1.bf16.msra.mxu1 %v3492_v37  ;;  %v970_v27 = vld [vmem:[#allocation2 + $0x668] sm:$0xff] }
 0x24e   :  { %2573 = vmatprep.subr.bf16.mxu1 %v3613_v41  ;;  %v830_v31 = vld [vmem:[#allocation2 + $0x208] sm:$0xff]  ;;  %v3693_v36 = vcombine.high %v966_v25, %v970_v27  ;;  %v3692_v41 = vcombine.low %v966_v25, %v970_v27  ;;  %v783_v25 = vld [vmem:[#allocation2 + $0x90] sm:$0xff] }
 0x24f   :  { %2613 = vmatpush1.bf16.msra.mxu0 %v3620_v39  ;;  %v834_v33 = vld [vmem:[#allocation2 + $0x228] sm:$0xff]  ;;  %v3564_v39 = vcombine.low %v838_v22, %v842_v24  ;;  %v911_v27 = vld [vmem:[#allocation2 + $0x490] sm:$0xff] }
 0x250   :  { %2614 = vmatprep.subr.bf16.mxu0 %v3741_v45  ;;  %v958_v34 = vld [vmem:[#allocation2 + $0x608] sm:$0xff]  ;;  %v3557_v42 = vcombine.high %v830_v31, %v834_v33  ;;  %v951_v45 = vld [vmem:[#allocation2 + $0x5d0] sm:$0xff] }
 0x251   :  { %2574 = vmatpush2.bf16.msra.mxu1 %v3612_v58  ;;  %v962_v37 = vld [vmem:[#allocation2 + $0x628] sm:$0xff]  ;;  %v955_v58 = vld [vmem:[#allocation2 + $0x5f0] sm:$0xff] }
 0x252   :  { %2575 = vmatprep.subr.bf16.mxu1 %v3605_v47  ;;  %v3685_v57 = vcombine.high %v958_v34, %v962_v37  ;;  %v3684_v47 = vcombine.low %v958_v34, %v962_v37  ;;  %v3679_v52 = vcombine.high %v951_v45, %v955_v58  ;;  %v775_v34 = vld [vmem:[#allocation2 + $0x50] sm:$0xff] }
 0x253   :  { %2615 = vmatpush2.bf16.msra.mxu0 %v3740_v46  ;;  %v3556_v46 = vcombine.low %v830_v31, %v834_v33  ;;  %v903_v37 = vld [vmem:[#allocation2 + $0x450] sm:$0xff] }
 0x254   :  { %2616 = vmatprep.subr.bf16.mxu0 %v3733_v51  ;;  %v943_v51 = vld [vmem:[#allocation2 + $0x590] sm:$0xff] }
 0x255   :  { %2576 = vmatpush2.bf16.msra.mxu1 %v3604_v53  ;;  %v947_v53 = vld [vmem:[#allocation2 + $0x5b0] sm:$0xff] }
 0x256   :  { %2577 = vmatprep.subr.bf16.mxu1 %v3597_v55  ;;  %v3678_v55 = vcombine.low %v951_v45, %v955_v58  ;;  %v3671_v59 = vcombine.high %v943_v51, %v947_v53  ;;  %v767_v45 = vld [vmem:[#allocation2 + $0x10] sm:$0xff] }
 0x257   :  { %2617 = vmatpush2.bf16.msra.mxu0 %v3732_v54  ;;  %v3550_v54 = vcombine.low %v823_v43, %v827_v44  ;;  %v895_v58 = vld [vmem:[#allocation2 + $0x410] sm:$0xff] }
 0x258   :  { %2618 = vmatprep.subr.bf16.mxu0 %v3725_v61  ;;  %v811_v61 = vld [vmem:[#allocation2 + $0x170] sm:$0xff] }
 0x259   :  { %2578 = vmatpush2.bf16.msra.mxu1 %v3596_v63  ;;  %v939_v63 = vld [vmem:[#allocation2 + $0x570] sm:$0xff]  ;;  %v3535_v4 = vcombine.high %v807_v60, %v811_v61 }
 0x25a   :  { %2579 = vmatprep.subr.bf16.mxu1 %v3589_v3  ;;  %v3670_v3 = vcombine.low %v943_v51, %v947_v53  ;;  %v3663_v5 = vcombine.high %v935_v62, %v939_v63  ;;  %v887_v51 = vld [vmem:[#allocation2 + $0x3d0] sm:$0xff] }
 0x25b   :  { %2619 = vmatpush2.bf16.msra.mxu0 %v3724_v0  ;;  %v3542_v0 = vcombine.low %v815_v49, %v819_v50  ;;  %v1015_v53 = vld [vmem:[#allocation2 + $0x7d0] sm:$0xff] }
 0x25c   :  { %2620 = vmatprep.subr.bf16.mxu0 %v3717_v7  ;;  %v803_v7 = vld [vmem:[#allocation2 + $0x130] sm:$0xff] }
 0x25d   :  { %2580 = vmatpush2.bf16.msra.mxu1 %v3588_v9  ;;  %v931_v9 = vld [vmem:[#allocation2 + $0x530] sm:$0xff]  ;;  %v3527_v12 = vcombine.high %v799_v6, %v803_v7 }
 0x25e   :  { %2581 = vmatprep.subr.bf16.mxu1 %v3581_v11  ;;  %v3662_v11 = vcombine.low %v935_v62, %v939_v63  ;;  %v3655_v13 = vcombine.high %v927_v8, %v931_v9  ;;  %v883_v62 = vld [vmem:[#allocation2 + $0x3b0] sm:$0xff] }
 0x25f   :  { %2621 = vmatpush2.bf16.msra.mxu0 %v3716_v10  ;;  %v3534_v10 = vcombine.low %v807_v60, %v811_v61  ;;  %v879_v61 = vld [vmem:[#allocation2 + $0x390] sm:$0xff] }
 0x260   :  { %2622 = vmatprep.subr.bf16.mxu0 %v3709_v15  ;;  %v795_v15 = vld [vmem:[#allocation2 + $0xf0] sm:$0xff] }
 0x261   :  { %2582 = vmatpush2.bf16.msra.mxu1 %v3580_v17  ;;  %v923_v17 = vld [vmem:[#allocation2 + $0x4f0] sm:$0xff]  ;;  %v3519_v22 = vcombine.high %v791_v14, %v795_v15 }
 0x262   :  { %2583 = vmatprep.subr.bf16.mxu1 %v3573_v19  ;;  %v3654_v19 = vcombine.low %v927_v8, %v931_v9  ;;  %v3647_v24 = vcombine.high %v919_v16, %v923_v17  ;;  %v1007_v63 = vld [vmem:[#allocation2 + $0x790] sm:$0xff] }
 0x263   :  { %2623 = vmatpush2.bf16.msra.mxu0 %v3708_v18  ;;  %v3526_v18 = vcombine.low %v799_v6, %v803_v7  ;;  %v871_v7 = vld [vmem:[#allocation2 + $0x350] sm:$0xff] }
 0x264   :  { %2624 = vmatprep.subr.bf16.mxu0 %v3701_v26  ;;  %v787_v26 = vld [vmem:[#allocation2 + $0xb0] sm:$0xff] }
 0x265   :  { %2584 = vmatpush2.bf16.msra.mxu1 %v3572_v28  ;;  %v915_v28 = vld [vmem:[#allocation2 + $0x4b0] sm:$0xff]  ;;  %v3511_v31 = vcombine.high %v783_v25, %v787_v26 }
 0x266   :  { %2585 = vmatprep.subr.bf16.mxu1 %v3565_v30  ;;  %v3646_v30 = vcombine.low %v919_v16, %v923_v17  ;;  %v3639_v33 = vcombine.high %v911_v27, %v915_v28  ;;  %v875_v8 = vld [vmem:[#allocation2 + $0x370] sm:$0xff] }
 0x267   :  { %2625 = vmatpush2.bf16.msra.mxu0 %v3700_v29  ;;  %v3518_v29 = vcombine.low %v791_v14, %v795_v15  ;;  %v999_v9 = vld [vmem:[#allocation2 + $0x750] sm:$0xff] }
 0x268   :  { %2626 = vmatprep.subr.bf16.mxu0 %v3693_v36  ;;  %v779_v36 = vld [vmem:[#allocation2 + $0x70] sm:$0xff] }
 0x269   :  { %2586 = vmatpush2.bf16.msra.mxu1 %v3564_v39  ;;  %v907_v39 = vld [vmem:[#allocation2 + $0x470] sm:$0xff]  ;;  %v3503_v43 = vcombine.high %v775_v34, %v779_v36 }
 0x26a   :  { %2587 = vmatprep.subr.bf16.mxu1 %v3557_v42  ;;  %v3638_v42 = vcombine.low %v911_v27, %v915_v28  ;;  %v3631_v44 = vcombine.high %v903_v37, %v907_v39  ;;  %v863_v15 = vld [vmem:[#allocation2 + $0x310] sm:$0xff] }
 0x26b   :  { %2627 = vmatpush2.bf16.msra.mxu0 %v3692_v41  ;;  %v3510_v41 = vcombine.low %v783_v25, %v787_v26  ;;  %v867_v16 = vld [vmem:[#allocation2 + $0x330] sm:$0xff] }
 0x26c   :  { %2628 = vmatprep.subr.bf16.mxu0 %v3685_v57  ;;  %v771_v57 = vld [vmem:[#allocation2 + $0x30] sm:$0xff] }
 0x26d   :  { %2588 = vmatpush2.bf16.msra.mxu1 %v3556_v46  ;;  %v899_v46 = vld [vmem:[#allocation2 + $0x430] sm:$0xff]  ;;  %v3495_v49 = vcombine.high %v767_v45, %v771_v57 }
 0x26e   :  { %2639 = vmatprep.subr.bf16.mxu1 %v3551_v48  ;;  %v3630_v48 = vcombine.low %v903_v37, %v907_v39  ;;  %v3623_v50 = vcombine.high %v895_v58, %v899_v46  ;;  %v991_v17 = vld [vmem:[#allocation2 + $0x710] sm:$0xff] }
 0x26f   :  { %2629 = vmatpush2.bf16.msra.mxu0 %v3684_v47  ;;  %v3502_v47 = vcombine.low %v775_v34, %v779_v36  ;;  %v855_v26 = vld [vmem:[#allocation2 + $0x2d0] sm:$0xff] }
 0x270   :  { %2680 = vmatprep.subr.bf16.mxu0 %v3679_v52  ;;  %2590 = vmatmul.mubr.bf16.vlgmr.msra.gmra.mxu1 %v4364_v32  ;;  %v891_v52 = vld [vmem:[#allocation2 + $0x3f0] sm:$0xff] }
 0x271   :  { %2640 = vmatpush1.bf16.msra.mxu1 %v3550_v54  ;;  %2671 = vmatprep.mubr.bf16.mxu1 %v4356_v1  ;;  %v1019_v54 = vld [vmem:[#allocation2 + $0x7f0] sm:$0xff] }
 0x272   :  { %2631 = vmatmul.mubr.bf16.vlgmr.msra.gmra.mxu0 %v4368_v35  ;;  %2641 = vmatprep.subr.bf16.mxu1 %v3543_v56  ;;  %v3622_v56 = vcombine.low %v895_v58, %v899_v46  ;;  %v3743_v60 = vcombine.high %v1015_v53, %v1019_v54  ;;  %v859_v27 = vld [vmem:[#allocation2 + $0x2f0] sm:$0xff] }
 0x273   :  { %2681 = vmatpush1.bf16.msra.mxu0 %v3678_v55  ;;  %2712 = vmatprep.mubr.bf16.mxu0 %v4358_v2  ;;  %v3494_v55 = vcombine.low %v767_v45, %v771_v57  ;;  %v983_v28 = vld [vmem:[#allocation2 + $0x6d0] sm:$0xff] }
 0x274   :  { %2682 = vmatprep.subr.bf16.mxu0 %v3671_v59  ;;  %v3615_v59 = vcombine.high %v887_v51, %v891_v52  ;;  %v847_v36 = vld [vmem:[#allocation2 + $0x290] sm:$0xff] }
 0x275   :  { %2642 = vmatpush1.bf16.msra.mxu1 %v3542_v0  ;;  %v1011_v0 = vld [vmem:[#allocation2 + $0x7b0] sm:$0xff] }
 0x276   :  { %2643 = vmatprep.subr.bf16.mxu1 %v3535_v4  ;;  %v3742_v4 = vcombine.low %v1015_v53, %v1019_v54  ;;  %v3735_v6 = vcombine.high %v1007_v63, %v1011_v0  ;;  %v851_v37 = vld [vmem:[#allocation2 + $0x2b0] sm:$0xff] }
 0x277   :  { %2683 = vmatpush1.bf16.msra.mxu0 %v3670_v3  ;;  %v3614_v3 = vcombine.low %v887_v51, %v891_v52  ;;  %v975_v39 = vld [vmem:[#allocation2 + $0x690] sm:$0xff] }
 0x278   :  { %2684 = vmatprep.subr.bf16.mxu0 %v3663_v5  ;;  %v3607_v5 = vcombine.high %v879_v61, %v883_v62  ;;  %v839_v57 = vld [vmem:[#allocation2 + $0x250] sm:$0xff] }
 0x279   :  { %2644 = vmatpush1.bf16.msra.mxu1 %v3534_v10  ;;  %v1003_v10 = vld [vmem:[#allocation2 + $0x770] sm:$0xff] }
 0x27a   :  { %2645 = vmatprep.subr.bf16.mxu1 %v3527_v12  ;;  %v3734_v12 = vcombine.low %v1007_v63, %v1011_v0  ;;  %v3727_v14 = vcombine.high %v999_v9, %v1003_v10  ;;  %v843_v58 = vld [vmem:[#allocation2 + $0x270] sm:$0xff]  ;;  %v828_v63 = vld [vmem:[#allocation2 + $0x1f8] sm:$0xff] }
 0x27b   :  { %2685 = vmatpush1.bf16.msra.mxu0 %v3662_v11  ;;  %v3606_v11 = vcombine.low %v879_v61, %v883_v62  ;;  %v967_v46 = vld [vmem:[#allocation2 + $0x650] sm:$0xff]  ;;  %v824_v62 = vld [vmem:[#allocation2 + $0x1d8] sm:$0xff] }
 0x27c   :  { %2686 = vmatprep.subr.bf16.mxu0 %v3655_v13  ;;  %v3599_v13 = vcombine.high %v871_v7, %v875_v8  ;;  %v831_v52 = vld [vmem:[#allocation2 + $0x210] sm:$0xff]  ;;  %v952_v0 = vld [vmem:[#allocation2 + $0x5d8] sm:$0xff] }
 0x27d   :  { %2646 = vmatpush1.bf16.msra.mxu1 %v3526_v18  ;;  %v995_v18 = vld [vmem:[#allocation2 + $0x730] sm:$0xff] }
 0x27e   :  { %2647 = vmatprep.subr.bf16.mxu1 %v3519_v22  ;;  %v3726_v22 = vcombine.low %v999_v9, %v1003_v10  ;;  %v3719_v25 = vcombine.high %v991_v17, %v995_v18  ;;  %v835_v53 = vld [vmem:[#allocation2 + $0x230] sm:$0xff]  ;;  %v820_v9 = vld [vmem:[#allocation2 + $0x1b8] sm:$0xff] }
 0x27f   :  { %2687 = vmatpush1.bf16.msra.mxu0 %v3654_v19  ;;  %v3598_v19 = vcombine.low %v871_v7, %v875_v8  ;;  %v959_v54 = vld [vmem:[#allocation2 + $0x610] sm:$0xff]  ;;  %v816_v8 = vld [vmem:[#allocation2 + $0x198] sm:$0xff] }
 0x280   :  { %2688 = vmatprep.subr.bf16.mxu0 %v3647_v24  ;;  %v3591_v24 = vcombine.high %v863_v15, %v867_v16  ;;  %v944_v10 = vld [vmem:[#allocation2 + $0x598] sm:$0xff] }
 0x281   :  { %2648 = vmatpush1.bf16.msra.mxu1 %v3518_v29  ;;  %v987_v29 = vld [vmem:[#allocation2 + $0x6f0] sm:$0xff] }
 0x282   :  { %2649 = vmatprep.subr.bf16.mxu1 %v3511_v31  ;;  %v3718_v31 = vcombine.low %v991_v17, %v995_v18  ;;  %v3711_v34 = vcombine.high %v983_v28, %v987_v29  ;;  %v812_v17 = vld [vmem:[#allocation2 + $0x178] sm:$0xff] }
 0x283   :  { %2689 = vmatpush1.bf16.msra.mxu0 %v3646_v30  ;;  %v3590_v30 = vcombine.low %v863_v15, %v867_v16  ;;  %v808_v16 = vld [vmem:[#allocation2 + $0x158] sm:$0xff] }
 0x284   :  { %2690 = vmatprep.subr.bf16.mxu0 %v3639_v33  ;;  %v3583_v33 = vcombine.high %v855_v26, %v859_v27  ;;  %v936_v18 = vld [vmem:[#allocation2 + $0x558] sm:$0xff] }
 0x285   :  { %2650 = vmatpush1.bf16.msra.mxu1 %v3510_v41  ;;  %v979_v41 = vld [vmem:[#allocation2 + $0x6b0] sm:$0xff] }
 0x286   :  { %2651 = vmatprep.subr.bf16.mxu1 %v3503_v43  ;;  %v3710_v43 = vcombine.low %v983_v28, %v987_v29  ;;  %v3703_v45 = vcombine.high %v975_v39, %v979_v41  ;;  %v804_v28 = vld [vmem:[#allocation2 + $0x138] sm:$0xff] }
 0x287   :  { %2691 = vmatpush1.bf16.msra.mxu0 %v3638_v42  ;;  %v3582_v42 = vcombine.low %v855_v26, %v859_v27  ;;  %v800_v27 = vld [vmem:[#allocation2 + $0x118] sm:$0xff] }
 0x288   :  { %2692 = vmatprep.subr.bf16.mxu0 %v3631_v44  ;;  %v3575_v44 = vcombine.high %v847_v36, %v851_v37  ;;  %v928_v29 = vld [vmem:[#allocation2 + $0x518] sm:$0xff] }
 0x289   :  { %2652 = vmatpush1.bf16.msra.mxu1 %v3502_v47  ;;  %v971_v47 = vld [vmem:[#allocation2 + $0x670] sm:$0xff] }
 0x28a   :  { %2653 = vmatprep.subr.bf16.mxu1 %v3495_v49  ;;  %v3702_v49 = vcombine.low %v975_v39, %v979_v41  ;;  %v3695_v51 = vcombine.high %v967_v46, %v971_v47  ;;  %v796_v39 = vld [vmem:[#allocation2 + $0xf8] sm:$0xff] }
 0x28b   :  { %2693 = vmatpush1.bf16.msra.mxu0 %v3630_v48  ;;  %v3574_v48 = vcombine.low %v847_v36, %v851_v37  ;;  %v792_v37 = vld [vmem:[#allocation2 + $0xd8] sm:$0xff] }
 0x28c   :  { %2694 = vmatprep.subr.bf16.mxu0 %v3623_v50  ;;  %v3567_v50 = vcombine.high %v839_v57, %v843_v58  ;;  %v920_v41 = vld [vmem:[#allocation2 + $0x4d8] sm:$0xff] }
 0x28d   :  { %2654 = vmatpush1.bf16.msra.mxu1 %v3494_v55  ;;  %v963_v55 = vld [vmem:[#allocation2 + $0x630] sm:$0xff] }
 0x28e   :  { %2655 = vmatprep.subr.bf16.mxu1 %v3615_v59  ;;  %v3694_v59 = vcombine.low %v967_v46, %v971_v47  ;;  %v3687_v61 = vcombine.high %v959_v54, %v963_v55  ;;  %v916_v46 = vld [vmem:[#allocation2 + $0x4b8] sm:$0xff]  ;;  %v3520_v47 = vcombine.low %v792_v37, %v796_v39 }
 0x28f   :  { %2695 = vmatpush1.bf16.msra.mxu0 %v3622_v56  ;;  %v3566_v56 = vcombine.low %v839_v57, %v843_v58  ;;  %v788_v57 = vld [vmem:[#allocation2 + $0xb8] sm:$0xff] }
 0x290   :  { %2696 = vmatprep.subr.bf16.mxu0 %v3743_v60  ;;  %v3559_v60 = vcombine.high %v831_v52, %v835_v53  ;;  %v912_v58 = vld [vmem:[#allocation2 + $0x498] sm:$0xff] }
 0x291   :  { %2656 = vmatpush2.bf16.msra.mxu1 %v3614_v3  ;;  %v956_v3 = vld [vmem:[#allocation2 + $0x5f8] sm:$0xff] }
 0x292   :  { %2657 = vmatprep.subr.bf16.mxu1 %v3607_v5  ;;  %v3686_v5 = vcombine.low %v959_v54, %v963_v55  ;;  %v3681_v7 = vcombine.high %v952_v0, %v956_v3  ;;  %v908_v54 = vld [vmem:[#allocation2 + $0x478] sm:$0xff] }
 0x293   :  { %2697 = vmatpush2.bf16.msra.mxu0 %v3742_v4  ;;  %v3558_v4 = vcombine.low %v831_v52, %v835_v53  ;;  %v780_v52 = vld [vmem:[#allocation2 + $0x78] sm:$0xff] }
 0x294   :  { %2698 = vmatprep.subr.bf16.mxu0 %v3735_v6  ;;  %v3553_v6 = vcombine.high %v824_v62, %v828_v63  ;;  %v904_v53 = vld [vmem:[#allocation2 + $0x458] sm:$0xff] }
 0x295   :  { %2658 = vmatpush2.bf16.msra.mxu1 %v3606_v11  ;;  %v948_v11 = vld [vmem:[#allocation2 + $0x5b8] sm:$0xff] }
 0x296   :  { %2659 = vmatprep.subr.bf16.mxu1 %v3599_v13  ;;  %v3680_v13 = vcombine.low %v952_v0, %v956_v3  ;;  %v3673_v15 = vcombine.high %v944_v10, %v948_v11  ;;  %v900_v0 = vld [vmem:[#allocation2 + $0x438] sm:$0xff] }
 0x297   :  { %2699 = vmatpush2.bf16.msra.mxu0 %v3734_v12  ;;  %v3552_v12 = vcombine.low %v824_v62, %v828_v63  ;;  %v772_v62 = vld [vmem:[#allocation2 + $0x38] sm:$0xff] }
 0x298   :  { %2700 = vmatprep.subr.bf16.mxu0 %v3727_v14  ;;  %v3545_v14 = vcombine.high %v816_v8, %v820_v9  ;;  %v896_v63 = vld [vmem:[#allocation2 + $0x418] sm:$0xff] }
 0x299   :  { %2660 = vmatpush2.bf16.msra.mxu1 %v3598_v19  ;;  %v940_v19 = vld [vmem:[#allocation2 + $0x578] sm:$0xff] }
 0x29a   :  { %2661 = vmatprep.subr.bf16.mxu1 %v3591_v24  ;;  %v3672_v24 = vcombine.low %v944_v10, %v948_v11  ;;  %v3665_v26 = vcombine.high %v936_v18, %v940_v19  ;;  %v1020_v10 = vld [vmem:[#allocation2 + $0x7f8] sm:$0xff] }
 0x29b   :  { %2701 = vmatpush2.bf16.msra.mxu0 %v3726_v22  ;;  %v3544_v22 = vcombine.low %v816_v8, %v820_v9  ;;  %v892_v8 = vld [vmem:[#allocation2 + $0x3f8] sm:$0xff] }
 0x29c   :  { %2702 = vmatprep.subr.bf16.mxu0 %v3719_v25  ;;  %v3537_v25 = vcombine.high %v808_v16, %v812_v17  ;;  %v1016_v9 = vld [vmem:[#allocation2 + $0x7d8] sm:$0xff] }
 0x29d   :  { %2662 = vmatpush2.bf16.msra.mxu1 %v3590_v30  ;;  %v932_v30 = vld [vmem:[#allocation2 + $0x538] sm:$0xff] }
 0x29e   :  { %2663 = vmatprep.subr.bf16.mxu1 %v3583_v33  ;;  %v3664_v33 = vcombine.low %v936_v18, %v940_v19  ;;  %v3657_v36 = vcombine.high %v928_v29, %v932_v30  ;;  %v1012_v18 = vld [vmem:[#allocation2 + $0x7b8] sm:$0xff] }
 0x29f   :  { %2703 = vmatpush2.bf16.msra.mxu0 %v3718_v31  ;;  %v3536_v31 = vcombine.low %v808_v16, %v812_v17  ;;  %v884_v16 = vld [vmem:[#allocation2 + $0x3b8] sm:$0xff] }
 0x2a0   :  { %2704 = vmatprep.subr.bf16.mxu0 %v3711_v34  ;;  %v3529_v34 = vcombine.high %v800_v27, %v804_v28  ;;  %v1008_v17 = vld [vmem:[#allocation2 + $0x798] sm:$0xff] }
 0x2a1   :  { %2664 = vmatpush2.bf16.msra.mxu1 %v3582_v42  ;;  %v924_v42 = vld [vmem:[#allocation2 + $0x4f8] sm:$0xff] }
 0x2a2   :  { %2665 = vmatprep.subr.bf16.mxu1 %v3575_v44  ;;  %v3521_v44 = vcombine.high %v792_v37, %v796_v39  ;;  %v868_v37 = vld [vmem:[#allocation2 + $0x338] sm:$0xff] }
 0x2a3   :  { %2705 = vmatpush2.bf16.msra.mxu0 %v3710_v43  ;;  %v3528_v43 = vcombine.low %v800_v27, %v804_v28  ;;  %v876_v27 = vld [vmem:[#allocation2 + $0x378] sm:$0xff] }
 0x2a4   :  { %2706 = vmatprep.subr.bf16.mxu0 %v3703_v45  ;;  %v784_v45 = vld [vmem:[#allocation2 + $0x98] sm:$0xff] }
 0x2a5   :  { %2666 = vmatpush2.bf16.msra.mxu1 %v3574_v48  ;;  %v3648_v48 = vcombine.low %v920_v41, %v924_v42  ;;  %v3512_v55 = vcombine.low %v784_v45, %v788_v57  ;;  %v1000_v28 = vld [vmem:[#allocation2 + $0x758] sm:$0xff] }
 0x2a6   :  { %2667 = vmatprep.subr.bf16.mxu1 %v3567_v50  ;;  %v3641_v50 = vcombine.high %v912_v58, %v916_v46  ;;  %v992_v39 = vld [vmem:[#allocation2 + $0x718] sm:$0xff] }
 0x2a7   :  { %2707 = vmatpush2.bf16.msra.mxu0 %v3702_v49  ;;  %v3513_v49 = vcombine.high %v784_v45, %v788_v57  ;;  %v860_v45 = vld [vmem:[#allocation2 + $0x2f8] sm:$0xff] }
 0x2a8   :  { %2708 = vmatprep.subr.bf16.mxu0 %v3695_v51  ;;  %v776_v51 = vld [vmem:[#allocation2 + $0x58] sm:$0xff] }
 0x2a9   :  { %2668 = vmatpush2.bf16.msra.mxu1 %v3566_v56  ;;  %v3640_v56 = vcombine.low %v912_v58, %v916_v46  ;;  %v3504_v3 = vcombine.low %v776_v51, %v780_v52  ;;  %v984_v57 = vld [vmem:[#allocation2 + $0x6d8] sm:$0xff] }
 0x2aa   :  { %2669 = vmatprep.subr.bf16.mxu1 %v3559_v60  ;;  %v3633_v60 = vcombine.high %v904_v53, %v908_v54  ;;  %v988_v58 = vld [vmem:[#allocation2 + $0x6f8] sm:$0xff] }
 0x2ab   :  { %2709 = vmatpush2.bf16.msra.mxu0 %v3694_v59  ;;  %v3505_v59 = vcombine.high %v776_v51, %v780_v52  ;;  %v852_v51 = vld [vmem:[#allocation2 + $0x2b8] sm:$0xff] }
 0x2ac   :  { %2710 = vmatprep.subr.bf16.mxu0 %v3687_v61  ;;  %v768_v61 = vld [vmem:[#allocation2 + $0x18] sm:$0xff] }
 0x2ad   :  { %2670 = vmatpush2.bf16.msra.mxu1 %v3558_v4  ;;  %v3632_v4 = vcombine.low %v904_v53, %v908_v54  ;;  %v3496_v11 = vcombine.low %v768_v61, %v772_v62  ;;  %v976_v52 = vld [vmem:[#allocation2 + $0x698] sm:$0xff] }
 0x2ae   :  { %2721 = vmatprep.subr.bf16.mxu1 %v3553_v6  ;;  %v3625_v6 = vcombine.high %v896_v63, %v900_v0  ;;  %v980_v53 = vld [vmem:[#allocation2 + $0x6b8] sm:$0xff] }
 0x2af   :  { %2711 = vmatpush2.bf16.msra.mxu0 %v3686_v5  ;;  %v3497_v5 = vcombine.high %v768_v61, %v772_v62  ;;  %v844_v61 = vld [vmem:[#allocation2 + $0x278] sm:$0xff] }
 0x2b0   :  { %2762 = vmatprep.subr.bf16.mxu0 %v3681_v7  ;;  %2672 = vmatmul.mubr.bf16.vlgmr.msra.gmra.mxu1 %v4364_v32  ;;  %v888_v7 = vld [vmem:[#allocation2 + $0x3d8] sm:$0xff] }
 0x2b1   :  { %2722 = vmatpush1.bf16.msra.mxu1 %v3552_v12  ;;  %2753 = vmatprep.mubr.bf16.mxu1 %v4356_v1  ;;  %v3656_v1 = vcombine.low %v928_v29, %v932_v30  ;;  %v3624_v12 = vcombine.low %v896_v63, %v900_v0  ;;  %v3616_v19 = vcombine.low %v888_v7, %v892_v8  ;;  %v1004_v29 = vld [vmem:[#allocation2 + $0x778] sm:$0xff] }
 0x2b2   :  { %2713 = vmatmul.mubr.bf16.vlgmr.msra.gmra.mxu0 %v4368_v35  ;;  %2723 = vmatprep.subr.bf16.mxu1 %v3545_v14  ;;  %v3745_v14 = vcombine.high %v1016_v9, %v1020_v10  ;;  %v968_v62 = vld [vmem:[#allocation2 + $0x658] sm:$0xff] }
 0x2b3   :  { %2763 = vmatpush1.bf16.msra.mxu0 %v3680_v13  ;;  %2794 = vmatprep.mubr.bf16.mxu0 %v4358_v2  ;;  %v3649_v2 = vcombine.high %v920_v41, %v924_v42  ;;  %v3617_v13 = vcombine.high %v888_v7, %v892_v8  ;;  %v996_v41 = vld [vmem:[#allocation2 + $0x738] sm:$0xff] }
 0x2b4   :  { %2764 = vmatprep.subr.bf16.mxu0 %v3673_v15  ;;  %v880_v15 = vld [vmem:[#allocation2 + $0x398] sm:$0xff] }
 0x2b5   :  { %2724 = vmatpush1.bf16.msra.mxu1 %v3544_v22  ;;  %v3744_v22 = vcombine.low %v1016_v9, %v1020_v10  ;;  %v3608_v30 = vcombine.low %v880_v15, %v884_v16  ;;  %v972_v63 = vld [vmem:[#allocation2 + $0x678] sm:$0xff] }
 0x2b6   :  { %2725 = vmatprep.subr.bf16.mxu1 %v3537_v25  ;;  %v3737_v25 = vcombine.high %v1008_v17, %v1012_v18  ;;  %v836_v7 = vld [vmem:[#allocation2 + $0x238] sm:$0xff] }
 0x2b7   :  { %2765 = vmatpush1.bf16.msra.mxu0 %v3672_v24  ;;  %v3609_v24 = vcombine.high %v880_v15, %v884_v16  ;;  %v960_v8 = vld [vmem:[#allocation2 + $0x618] sm:$0xff] }
 0x2b8   :  { %2766 = vmatprep.subr.bf16.mxu0 %v3665_v26  ;;  %v872_v26 = vld [vmem:[#allocation2 + $0x358] sm:$0xff] }
 0x2b9   :  { %2726 = vmatpush1.bf16.msra.mxu1 %v3536_v31  ;;  %v3736_v31 = vcombine.low %v1008_v17, %v1012_v18  ;;  %v3600_v42 = vcombine.low %v872_v26, %v876_v27  ;;  %v964_v9 = vld [vmem:[#allocation2 + $0x638] sm:$0xff] }
 0x2ba   :  { %2727 = vmatprep.subr.bf16.mxu1 %v3529_v34  ;;  %v3729_v34 = vcombine.high %v1000_v28, %v1004_v29  ;;  %v3688_v15 = vcombine.low %v960_v8, %v964_v9  ;;  %v4033_v16 = vld [vmem:[#allocation3 + $0x78] sm:$0xff]  }
 0x2bb   :  { %2767 = vmatpush1.bf16.msra.mxu0 %v3664_v33  ;;  %v3601_v33 = vcombine.high %v872_v26, %v876_v27  ;;  %v4049_v17 = vld [vmem:[#allocation3 + $0xf8] sm:$0xff]   ;;  %v4051_v26 = vld [vmem:[#allocation3 + $0xf0] sm:$0xff]  }
 0x2bc   :  { %2768 = vmatprep.subr.bf16.mxu0 %v3657_v36  ;;  %v864_v36 = vld [vmem:[#allocation2 + $0x318] sm:$0xff] }
 0x2bd   :  { %2728 = vmatpush1.bf16.msra.mxu1 %v3528_v43  ;;  %v3728_v43 = vcombine.low %v1000_v28, %v1004_v29  ;;  %v3592_v46 = vcombine.low %v864_v36, %v868_v37  ;;  %v4034_v18 = vld [vmem:[#allocation3 + $0x38] sm:$0xff]   ;;  %v4036_v29 = vld [vmem:[#allocation3 + $0x30] sm:$0xff]  }
 0x2be   :  { %2729 = vmatprep.subr.bf16.mxu1 %v3521_v44  ;;  %v3721_v44 = vcombine.high %v992_v39, %v996_v41 }
 0x2bf   :  { %2769 = vmatpush1.bf16.msra.mxu0 %v3656_v1  ;;  %v3593_v1 = vcombine.high %v864_v36, %v868_v37  ;;  %v4053_v37 = vld [vmem:[#allocation3 + $0xe8] sm:$0xff]  }
 0x2c0   :  { %2770 = vmatprep.subr.bf16.mxu0 %v3649_v2  ;;  %v856_v2 = vld [vmem:[#allocation2 + $0x2d8] sm:$0xff] }
 0x2c1   :  { %2730 = vmatpush1.bf16.msra.mxu1 %v3520_v47  ;;  %v3720_v47 = vcombine.low %v992_v39, %v996_v41  ;;  %v3584_v54 = vcombine.low %v856_v2, %v860_v45 }
 0x2c2   :  { %2731 = vmatprep.subr.bf16.mxu1 %v3513_v49  ;;  %v3713_v49 = vcombine.high %v984_v57, %v988_v58 }
 0x2c3   :  { %2771 = vmatpush1.bf16.msra.mxu0 %v3648_v48  ;;  %v3585_v48 = vcombine.high %v856_v2, %v860_v45  ;;  %v4055_v2 = vld [vmem:[#allocation3 + $0xe0] sm:$0xff]  }
 0x2c4   :  { %2772 = vmatprep.subr.bf16.mxu0 %v3641_v50  ;;  %v848_v50 = vld [vmem:[#allocation2 + $0x298] sm:$0xff] }
 0x2c5   :  { %2732 = vmatpush1.bf16.msra.mxu1 %v3512_v55  ;;  %v3712_v55 = vcombine.low %v984_v57, %v988_v58  ;;  %v3576_v0 = vcombine.low %v848_v50, %v852_v51  ;;  %v4040_v57 = vld [vmem:[#allocation3 + $0x20] sm:$0xff]  }
 0x2c6   :  { %2733 = vmatprep.subr.bf16.mxu1 %v3505_v59  ;;  %v3705_v59 = vcombine.high %v976_v52, %v980_v53 }
 0x2c7   :  { %2773 = vmatpush1.bf16.msra.mxu0 %v3640_v56  ;;  %v3577_v56 = vcombine.high %v848_v50, %v852_v51  ;;  %v4042_v50 = vld [vmem:[#allocation3 + $0x18] sm:$0xff]  }
 0x2c8   :  { %2774 = vmatprep.subr.bf16.mxu0 %v3633_v60  ;;  %v840_v60 = vld [vmem:[#allocation2 + $0x258] sm:$0xff] }
 0x2c9   :  { %2734 = vmatpush1.bf16.msra.mxu1 %v3504_v3  ;;  %v3704_v3 = vcombine.low %v976_v52, %v980_v53  ;;  %v3568_v10 = vcombine.low %v840_v60, %v844_v61  ;;  %v4043_v52 = vld [vmem:[#allocation3 + $0x50] sm:$0xff]   ;;  %v4058_v53 = vld [vmem:[#allocation3 + $0x98] sm:$0xff]  }
 0x2ca   :  { %2735 = vmatprep.subr.bf16.mxu1 %v3497_v5  ;;  %v3697_v5 = vcombine.high %v968_v62, %v972_v63 }
 0x2cb   :  { %2775 = vmatpush1.bf16.msra.mxu0 %v3632_v4  ;;  %v3569_v4 = vcombine.high %v840_v60, %v844_v61  ;;  %v4061_v60 = vld [vmem:[#allocation3 + $0xc8] sm:$0xff]  }
 0x2cc   :  { %2776 = vmatprep.subr.bf16.mxu0 %v3625_v6  ;;  %v832_v6 = vld [vmem:[#allocation2 + $0x218] sm:$0xff]  ;;  %v4046_v61 = vld [vmem:[#allocation3 + $0x8] sm:$0xff]  }
 0x2cd   :  { %2736 = vmatpush1.bf16.msra.mxu1 %v3496_v11  ;;  %v3696_v11 = vcombine.low %v968_v62, %v972_v63  ;;  %v4047_v63 = vld [vmem:[#allocation3 + $0x40] sm:$0xff]  }
 0x2ce   :  { %2737 = vmatprep.subr.bf16.mxu1 %v3617_v13  ;;  %v3689_v13 = vcombine.high %v960_v8, %v964_v9  ;;  %v4081_v8 = vld [vmem:[#allocation3 + $0x1f8] sm:$0xff]  }
 0x2cf   :  { %2777 = vmatpush1.bf16.msra.mxu0 %v3624_v12  ;;  %v3561_v12 = vcombine.high %v832_v6, %v836_v7  ;;  %v4066_v9 = vld [vmem:[#allocation3 + $0x138] sm:$0xff]  }
 0x2d0   :  { %2778 = vmatprep.subr.bf16.mxu0 %v3745_v14  ;;  %v3560_v14 = vcombine.low %v832_v6, %v836_v7  ;;  %v4064_v6 = vld [vmem:[#allocation3 + $0x80] sm:$0xff]   ;;  %v4065_v7 = vld [vmem:[#allocation3 + $0x178] sm:$0xff]  }
 0x2d1   :  { %2738 = vmatpush2.bf16.msra.mxu1 %v3616_v19  ;;  %v4385_v19 = vld [vmem:[%s4419_s6] sm:$0xff] }
 0x2d2   :  { %2739 = vmatprep.subr.bf16.mxu1 %v3609_v24  ;;  %v4050_v24 = vld [vmem:[#allocation3 + $0xb8] sm:$0xff]   ;;  %v1158_v58 = vrot.slane %v4385_v19, %v4328_v21 }
 0x2d3   :  { %2779 = vmatpush2.bf16.msra.mxu0 %v3744_v22  ;;  %v4035_v22 = vld [vmem:[#allocation3 + $0x70] sm:$0xff]  }
 0x2d4   :  { %2780 = vmatprep.subr.bf16.mxu0 %v3737_v25  ;;  %v1162_v25 = vrot.slane %v4385_v19, %v4334_v23 }
 0x2d5   :  { %2740 = vmatpush2.bf16.msra.mxu1 %v3608_v30 }
 0x2d6   :  { %2741 = vmatprep.subr.bf16.mxu1 %v3601_v33  ;;  %v4052_v33 = vld [vmem:[#allocation3 + $0xb0] sm:$0xff]  }
 0x2d7   :  { %2781 = vmatpush2.bf16.msra.mxu0 %v3736_v31  ;;  %v4037_v31 = vld [vmem:[#allocation3 + $0x68] sm:$0xff]  }
 0x2d8   :  { %2782 = vmatprep.subr.bf16.mxu0 %v3729_v34 }
 0x2d9   :  { %2742 = vmatpush2.bf16.msra.mxu1 %v3600_v42  ;;  %v4038_v42 = vld [vmem:[#allocation3 + $0x28] sm:$0xff]  }
 0x2da   :  { %2743 = vmatprep.subr.bf16.mxu1 %v3593_v1 }
 0x2db   :  { %2783 = vmatpush2.bf16.msra.mxu0 %v3728_v43  ;;  %v4039_v43 = vld [vmem:[#allocation3 + $0x60] sm:$0xff]  }
 0x2dc   :  { %2784 = vmatprep.subr.bf16.mxu0 %v3721_v44 }
 0x2dd   :  { %2744 = vmatpush2.bf16.msra.mxu1 %v3592_v46  ;;  %v4041_v46 = vld [vmem:[#allocation3 + $0x58] sm:$0xff]  }
 0x2de   :  { %2745 = vmatprep.subr.bf16.mxu1 %v3585_v48 }
 0x2df   :  { %2785 = vmatpush2.bf16.msra.mxu0 %v3720_v47  ;;  %v4056_v47 = vld [vmem:[#allocation3 + $0xa0] sm:$0xff]  }
 0x2e0   :  { %2786 = vmatprep.subr.bf16.mxu0 %v3713_v49  ;;  %v4057_v49 = vld [vmem:[#allocation3 + $0xd8] sm:$0xff]  }
 0x2e1   :  { %2746 = vmatpush2.bf16.msra.mxu1 %v3584_v54  ;;  %v4059_v54 = vld [vmem:[#allocation3 + $0xd0] sm:$0xff]  }
 0x2e2   :  { %2747 = vmatprep.subr.bf16.mxu1 %v3577_v56  ;;  %v4045_v56 = vld [vmem:[#allocation3 + $0x48] sm:$0xff]  }
 0x2e3   :  { %2787 = vmatpush2.bf16.msra.mxu0 %v3712_v55  ;;  %v4044_v55 = vld [vmem:[#allocation3 + $0x10] sm:$0xff]  }
 0x2e4   :  { %2788 = vmatprep.subr.bf16.mxu0 %v3705_v59  ;;  %v4060_v59 = vld [vmem:[#allocation3 + $0x90] sm:$0xff]  }
 0x2e5   :  { %2748 = vmatpush2.bf16.msra.mxu1 %v3576_v0  ;;  %v4062_v0 = vld [vmem:[#allocation3 + $0x88] sm:$0xff]  }
 0x2e6   :  { %2749 = vmatprep.subr.bf16.mxu1 %v3569_v4  ;;  %v4048_v4 = vld [vmem:[#allocation3] sm:$0xff]  }
 0x2e7   :  { %2789 = vmatpush2.bf16.msra.mxu0 %v3704_v3  ;;  %v4063_v3 = vld [vmem:[#allocation3 + $0xc0] sm:$0xff]  }
 0x2e8   :  { %2790 = vmatprep.subr.bf16.mxu0 %v3697_v5 }
 0x2e9   :  { %2750 = vmatpush2.bf16.msra.mxu1 %v3568_v10 }
 0x2ea   :  { %2751 = vmatprep.subr.bf16.mxu1 %v3561_v12  ;;  %v4068_v12 = vld [vmem:[#allocation3 + $0x130] sm:$0xff]  }
 0x2eb   :  { %2791 = vmatpush2.bf16.msra.mxu0 %v3696_v11  ;;  %v4067_v11 = vld [vmem:[#allocation3 + $0x170] sm:$0xff]  }
 0x2ec   :  { %2792 = vmatprep.subr.bf16.mxu0 %v3689_v13  ;;  %v4069_v13 = vld [vmem:[#allocation3 + $0x168] sm:$0xff]  }
 0x2ed   :  { %2752 = vmatpush2.bf16.msra.mxu1 %v3560_v14  ;;  %v4070_v14 = vld [vmem:[#allocation3 + $0x128] sm:$0xff]  }
 0x2ee   :  { %3813 = vmatprep.subr.bf16.mxu1 %v4033_v16  ;;  %v4072_v16 = vld [vmem:[#allocation3 + $0x120] sm:$0xff]  }
 0x2ef   :  { %2793 = vmatpush2.bf16.msra.mxu0 %v3688_v15  ;;  %v4071_v15 = vld [vmem:[#allocation3 + $0x160] sm:$0xff]  }
 0x2f0   :  { %3835 = vmatprep.subr.bf16.mxu0 %v4049_v17  ;;  %v2509_v27 = vpop.f32.mrf.mxu1  ;;  %2754 = vmatmul.mubr.bf16.vlgmr.msra.gmra.mxu1 %v4364_v32  ;;  %v4073_v17 = vld [vmem:[#allocation3 + $0x158] sm:$0xff]  }
 0x2f1   :  { %3814 = vmatpush3.bf16.msra.mxu1 %v4034_v18  ;;  %v2510_v51 = vadd.f32 %v2509_v27, %v1158_v58  ;;  %v4074_v18 = vld [vmem:[#allocation3 + $0x118] sm:$0xff]   ;;  %v4079_v27 = vld [vmem:[#allocation3 + $0x140] sm:$0xff]  }
 0x2f2   :  { %v2550_v28 = vpop.f32.mrf.mxu0  ;;  %2795 = vmatmul.mubr.bf16.vlgmr.msra.gmra.mxu0 %v4368_v35  ;;  %v2511_v30 = vpop.f32.mrf.mxu1  ;;  %3815 = vmatprep.subr.bf16.mxu1 %v4035_v22  ;;  %v4054_v35 = vld [vmem:[#allocation3 + $0xa8] sm:$0xff]   ;;  %v4075_v22 = vld [vmem:[#allocation3 + $0x150] sm:$0xff]  }
 0x2f3   :  { %3836 = vmatpush3.bf16.msra.mxu0 %v4050_v24  ;;  %v2512_v34 = vadd.f32 %v2511_v30, %v1162_v25  ;;  %v2551_v21 = vadd.f32 %v2550_v28, %v2510_v51  ;;  %v4076_v24 = vld [vmem:[#allocation3 + $0x110] sm:$0xff]   ;;  %v4077_v25 = vld [vmem:[#allocation3 + $0x148] sm:$0xff]   ;;  %v4080_v28 = vld [vmem:[#allocation3 + $0x100] sm:$0xff]   ;;  %v1170_v30 = vrot.slane %v4385_v19, %v341_v40 }
 0x2f4   :  { %v2552_v36 = vpop.f32.mrf.mxu0  ;;  %3837 = vmatprep.subr.bf16.mxu0 %v4051_v26  ;;  %v2513_v23 = vpop.f32.mrf.mxu1  ;;  %v4078_v26 = vld [vmem:[#allocation3 + $0x108] sm:$0xff]   ;;  %v4083_v40 = vld [vmem:[#allocation3 + $0x1f0] sm:$0xff]   ;;  %v4089_v51 = vld [vmem:[#allocation3 + $0x1d8] sm:$0xff]  }
 0x2f5   :  { %v2553_v39 = vadd.f32 %v2552_v36, %v2512_v34  ;;  %3816 = vmatpush3.bf16.msra.mxu1 %v4036_v29  ;;  %v2803_v62 = vmul.f32 0.2, %v2551_v21  ;;  %v1166_v29 = vrot.slane %v4385_v19, %v337_v38 }
 0x2f6   :  { %v2554_v41 = vpop.f32.mrf.mxu0  ;;  %v2514_v32 = vpop.f32.mrf.mxu1  ;;  %3817 = vmatprep.subr.bf16.mxu1 %v4037_v31 }
 0x2f7   :  { %3838 = vmatpush3.bf16.msra.mxu0 %v4052_v33  ;;  %v2804_v1 = vmul.f32 0.2, %v2553_v39  ;;  %v2811_v5 = vmax.f32 %v2551_v21, %v2803_v62  ;;  %v4094_v21 = vld [vmem:[#allocation3 + $0x188] sm:$0xff]  }
 0x2f8   :  { %v2555_v44 = vpop.f32.mrf.mxu0  ;;  %3839 = vmatprep.subr.bf16.mxu0 %v4053_v37 }
 0x2f9   :  { %v2812_v45 = vmax.f32 %v2553_v39, %v2804_v1  ;;  %3818 = vmatpush3.bf16.msra.mxu1 %v4038_v42  ;;  %v2819_v10 = vpack.c.bf16 %v2811_v5, %v2811_v5 }
 0x2fa   :  { %3819 = vmatprep.subr.bf16.mxu1 %v4039_v43 }
 0x2fb   :  { %3840 = vmatpush3.bf16.msra.mxu0 %v4054_v35  ;;  %v2820_v48 = vpack.c.bf16 %v2812_v45, %v2812_v45 }
 0x2fc   :  { %3841 = vmatprep.subr.bf16.mxu0 %v4055_v2 }
 0x2fd   :  { %3820 = vmatpush3.bf16.msra.mxu1 %v4040_v57  ;;  %3250 = vmatprep.mubr.bf16.mxu1 %v2820_v48  ;;  %v4082_v57 = vld [vmem:[#allocation3 + $0x1b8] sm:$0xff]   ;;  %v4086_v48 = vld [vmem:[#allocation3 + $0x1a8] sm:$0xff]  }
 0x2fe   :  { %3821 = vmatprep.subr.bf16.mxu1 %v4041_v46  ;;  %v4084_v46 = vld [vmem:[#allocation3 + $0x1b0] sm:$0xff]  }
 0x2ff   :  { %3842 = vmatpush3.bf16.msra.mxu0 %v4056_v47  ;;  %v4085_v47 = vld [vmem:[#allocation3 + $0x1e8] sm:$0xff]  }
 0x300   :  { %3843 = vmatprep.subr.bf16.mxu0 %v4057_v49  ;;  %v4087_v49 = vld [vmem:[#allocation3 + $0x1e0] sm:$0xff]  }
 0x301   :  { %3822 = vmatpush3.bf16.msra.mxu1 %v4042_v50  ;;  %v4088_v50 = vld [vmem:[#allocation3 + $0x1a0] sm:$0xff]  }
 0x302   :  { %3823 = vmatprep.subr.bf16.mxu1 %v4043_v52  ;;  %v4090_v52 = vld [vmem:[#allocation3 + $0x198] sm:$0xff]  }
 0x303   :  { %3844 = vmatpush3.bf16.msra.mxu0 %v4058_v53  ;;  %v4091_v53 = vld [vmem:[#allocation3 + $0x1d0] sm:$0xff]  }
 0x304   :  { %3845 = vmatprep.subr.bf16.mxu0 %v4059_v54  ;;  %v4092_v54 = vld [vmem:[#allocation3 + $0x190] sm:$0xff]  }
 0x305   :  { %3824 = vmatpush3.bf16.msra.mxu1 %v4044_v55  ;;  %v4093_v55 = vld [vmem:[#allocation3 + $0x1c8] sm:$0xff]  }
 0x306   :  { %3825 = vmatprep.subr.bf16.mxu1 %v4045_v56  ;;  %v4095_v56 = vld [vmem:[#allocation3 + $0x1c0] sm:$0xff]  }
 0x307   :  { %3846 = vmatpush3.bf16.msra.mxu0 %v4060_v59  ;;  %v4096_v59 = vld [vmem:[#allocation3 + $0x180] sm:$0xff]  }
 0x308   :  { %3847 = vmatprep.subr.bf16.mxu0 %v4061_v60  ;;  %v1173_v60 = vsub.s32 4, %v4325_v20 }
 0x309   :  { %3826 = vmatpush3.bf16.msra.mxu1 %v4046_v61  ;;  %v1177_v61 = vsub.s32 5, %v4325_v20 }
 0x30a   :  { %3827 = vmatprep.subr.bf16.mxu1 %v4047_v63  ;;  %v1174_v62 = vrot.slane %v4385_v19, %v1173_v60 }
 0x30b   :  { %3848 = vmatpush3.bf16.msra.mxu0 %v4062_v0  ;;  %v1178_v63 = vrot.slane %v4385_v19, %v1177_v61 }
 0x30c   :  { %3849 = vmatprep.subr.bf16.mxu0 %v4063_v3 }
 0x30d   :  { %3828 = vmatpush3.bf16.msra.mxu1 %v4048_v4 }
 0x30e   :  { %3857 = vmatprep.subr.bf16.mxu1 %v4065_v7 }
 0x30f   :  { %3850 = vmatpush3.bf16.msra.mxu0 %v4064_v6 }
 0x310   :  { %3879 = vmatprep.subr.bf16.mxu0 %v4081_v8  ;;  %3251 = vmatmul.mubr.bf16.vlgmr.msra.gmra.mxu1 %v2819_v10 }
 0x311   :  { %3858 = vmatpush3.bf16.msra.mxu1 %v4066_v9 }
 0x312   :  { %3859 = vmatprep.subr.bf16.mxu1 %v4067_v11 }
 0x315   :  { %3860 = vmatpush3.bf16.msra.mxu1 %v4068_v12 }
 0x316   :  { %3861 = vmatprep.subr.bf16.mxu1 %v4069_v13 }
 0x319   :  { %3862 = vmatpush3.bf16.msra.mxu1 %v4070_v14 }
 0x31a   :  { %3863 = vmatprep.subr.bf16.mxu1 %v4071_v15 }
 0x31d   :  { %3864 = vmatpush3.bf16.msra.mxu1 %v4072_v16 }
 0x31e   :  { %3865 = vmatprep.subr.bf16.mxu1 %v4073_v17 }
 0x321   :  { %3866 = vmatpush3.bf16.msra.mxu1 %v4074_v18 }
 0x322   :  { %3867 = vmatprep.subr.bf16.mxu1 %v4075_v22 }
 0x325   :  { %3868 = vmatpush3.bf16.msra.mxu1 %v4076_v24  ;;  %v1181_v24 = vsub.s32 6, %v4325_v20 }
 0x326   :  { %3869 = vmatprep.subr.bf16.mxu1 %v4077_v25  ;;  %v1185_v25 = vsub.s32 7, %v4325_v20 }
 0x329   :  { %3870 = vmatpush3.bf16.msra.mxu1 %v4078_v26  ;;  %v1182_v26 = vrot.slane %v4385_v19, %v1181_v24 }
 0x32a   :  { %3871 = vmatprep.subr.bf16.mxu1 %v4079_v27  ;;  %v1186_v27 = vrot.slane %v4385_v19, %v1185_v25 }
 0x32d   :  { %3872 = vmatpush3.bf16.msra.mxu1 %v4080_v28 }
 0x330   :  { %v2591_v31 = vpop.f32.mrf.mxu1 }
 0x331   :  { %v2592_v33 = vadd.f32 %v2591_v31, %v1166_v29 }
 0x332   :  { %v2632_v34 = vpop.f32.mrf.mxu0  ;;  %v2593_v36 = vpop.f32.mrf.mxu1 }
 0x333   :  { %v2633_v37 = vadd.f32 %v2632_v34, %v2592_v33  ;;  %v2594_v23 = vadd.f32 %v2593_v36, %v1170_v30 }
 0x334   :  { %v2634_v39 = vpop.f32.mrf.mxu0  ;;  %v2595_v41 = vpop.f32.mrf.mxu1 }
 0x335   :  { %v2805_v42 = vmul.f32 0.2, %v2633_v37  ;;  %v2635_v32 = vadd.f32 %v2634_v39, %v2594_v23 }
 0x336   :  { %v2636_v43 = vpop.f32.mrf.mxu0  ;;  %v2596_v35 = vpop.f32.mrf.mxu1 }
 0x337   :  { %v2806_v1 = vmul.f32 0.2, %v2635_v32  ;;  %v2813_v38 = vmax.f32 %v2633_v37, %v2805_v42 }
 0x338   :  { %v2637_v44 = vpop.f32.mrf.mxu0 }
 0x339   :  { %v2814_v2 = vmax.f32 %v2635_v32, %v2806_v1  ;;  %v2821_v58 = vpack.c.bf16 %v2813_v38, %v2813_v38 }
 0x33b   :  { %v2822_v45 = vpack.c.bf16 %v2814_v2, %v2814_v2 }
 0x33d   :  { %3290 = vmatprep.mubr.bf16.mxu0 %v2822_v45 }
 0x33e   :  { %3291 = vmatmul.mubr.bf16.vlgmr.msra.gmra.mxu0 %v2821_v58  ;;  %v3746_v58 = vld [vmem:[%s4421_s8] ss:$0 sm:$0xff]  ;;  %s4262_s8 = smov [#allocation13]  }
 0x33f   :  { %3880 = vmatpush3.bf16.msra.mxu0 %v4082_v57  ;;  %s3386_s20 = sshll.u32 %s4262_s8, 4  ;;  %s3387_s20 = int_to_ptr.vmem [resolvable:$true] %s3386_s20 }
 0x340   :  { %3881 = vmatprep.subr.bf16.mxu0 %v4083_v40  ;;  %s4219_s21 = scalar_lea.vmem %s3387_s20, 128  ;;  %p4224_p3 = scmp.lt.s32.totalorder %s3387_s20, %s3387_s20 }
 0x341   :  { %p4220_p2 = scmp.ne.s32.totalorder %s3387_s20, %s4219_s21  ;;  %p4225_p4 = scmp.lt.s32.totalorder %s4219_s21, %s4219_s21 }
 0x343   :  { %3882 = vmatpush3.bf16.msra.mxu0 %v4084_v46  ;;  %p4226_p5 = por %p4225_p4, %p4224_p3 }
 0x344   :  { %3883 = vmatprep.subr.bf16.mxu0 %v4085_v47 }
 0x345   :  { %p4227_p6 = pnand %p4226_p5, %p4220_p2 }
 0x347   :  { %3884 = vmatpush3.bf16.msra.mxu0 %v4086_v48 }
 0x348   :  { %3885 = vmatprep.subr.bf16.mxu0 %v4087_v49 }
 0x34b   :  { %3886 = vmatpush3.bf16.msra.mxu0 %v4088_v50 }
 0x34c   :  { %3887 = vmatprep.subr.bf16.mxu0 %v4089_v51 }
 0x34f   :  { %3888 = vmatpush3.bf16.msra.mxu0 %v4090_v52 }
 0x350   :  { %3889 = vmatprep.subr.bf16.mxu0 %v4091_v53 }
 0x353   :  { %3890 = vmatpush3.bf16.msra.mxu0 %v4092_v54 }
 0x354   :  { %3891 = vmatprep.subr.bf16.mxu0 %v4093_v55 }
 0x357   :  { %3892 = vmatpush3.bf16.msra.mxu0 %v4094_v21 }
 0x358   :  { %3893 = vmatprep.subr.bf16.mxu0 %v4095_v56 }
 0x35b   :  { %3894 = vmatpush3.bf16.msra.mxu0 %v4096_v59 }
 0x370   :  { %v2673_v0 = vpop.f32.mrf.mxu1 }
 0x371   :  { %v2674_v3 = vadd.f32 %v2673_v0, %v1174_v62 }
 0x372   :  { %v2714_v4 = vpop.f32.mrf.mxu0  ;;  %v2675_v5 = vpop.f32.mrf.mxu1 }
 0x373   :  { %v2715_v6 = vadd.f32 %v2714_v4, %v2674_v3  ;;  %v2676_v7 = vadd.f32 %v2675_v5, %v1178_v63 }
 0x374   :  { %v2716_v8 = vpop.f32.mrf.mxu0  ;;  %v2677_v9 = vpop.f32.mrf.mxu1 }
 0x375   :  { %v2807_v10 = vmul.f32 0.2, %v2715_v6  ;;  %v2717_v11 = vadd.f32 %v2716_v8, %v2676_v7 }
 0x376   :  { %v2718_v12 = vpop.f32.mrf.mxu0  ;;  %v2678_v13 = vpop.f32.mrf.mxu1 }
 0x377   :  { %v2808_v14 = vmul.f32 0.2, %v2717_v11  ;;  %v2815_v16 = vmax.f32 %v2715_v6, %v2807_v10 }
 0x378   :  { %v2719_v15 = vpop.f32.mrf.mxu0 }
 0x379   :  { %v2816_v17 = vmax.f32 %v2717_v11, %v2808_v14  ;;  %v2823_v22 = vpack.c.bf16 %v2815_v16, %v2815_v16 }
 0x37b   :  { %v2824_v18 = vpack.c.bf16 %v2816_v17, %v2816_v17 }
 0x37d   :  { %3330 = vmatprep.mubr.bf16.mxu1 %v2824_v18 }
 0x37e   :  { %3331 = vmatmul.mubr.bf16.vlgmr.msra.gmra.mxu1 %v2823_v22 }
 0x3b0   :  { %v2755_v28 = vpop.f32.mrf.mxu1 }
 0x3b1   :  { %v2756_v29 = vadd.f32 %v2755_v28, %v1182_v26 }
 0x3b2   :  { %v2796_v30 = vpop.f32.mrf.mxu0  ;;  %v2757_v31 = vpop.f32.mrf.mxu1 }
 0x3b3   :  { %v2797_v33 = vadd.f32 %v2796_v30, %v2756_v29  ;;  %v2758_v34 = vadd.f32 %v2757_v31, %v1186_v27 }
 0x3b4   :  { %v2798_v36 = vpop.f32.mrf.mxu0  ;;  %v2759_v37 = vpop.f32.mrf.mxu1 }
 0x3b5   :  { %v2809_v23 = vmul.f32 0.2, %v2797_v33  ;;  %v2799_v39 = vadd.f32 %v2798_v36, %v2758_v34 }
 0x3b6   :  { %v2800_v41 = vpop.f32.mrf.mxu0  ;;  %v2760_v42 = vpop.f32.mrf.mxu1 }
 0x3b7   :  { %v2810_v32 = vmul.f32 0.2, %v2799_v39  ;;  %v2817_v35 = vmax.f32 %v2797_v33, %v2809_v23 }
 0x3b8   :  { %v2801_v43 = vpop.f32.mrf.mxu0 }
 0x3b9   :  { %v2818_v20 = vmax.f32 %v2799_v39, %v2810_v32  ;;  %v2825_v44 = vpack.c.bf16 %v2817_v35, %v2817_v35 }
 0x3bb   :  { %v2826_v1 = vpack.c.bf16 %v2818_v20, %v2818_v20 }
 0x3bd   :  { %3370 = vmatprep.mubr.bf16.mxu0 %v2826_v1 }
 0x3be   :  { %3371 = vmatmul.mubr.bf16.vlgmr.msra.gmra.mxu0 %v2825_v44 }
 0x3d0   :  { %v3829_v19 = vpop.f32.mrf.mxu1 }
 0x3d2   :  { %v3830_v38 = vpop.f32.mrf.mxu1 }
 0x3d3   :  { %v3831_v2 = vadd.f32 %v3830_v38, %v3829_v19 }
 0x3d4   :  { %v3832_v45 = vpop.f32.mrf.mxu1 }
 0x3d5   :  { %v3253_v47 = vadd.f32 %v3831_v2, %v3746_v58 }
 0x3d6   :  { %v3833_v57 = vpop.f32.mrf.mxu1 }
 0x3fe   :  { %v3851_v40 = vpop.f32.mrf.mxu0 }
 0x400   :  { %v3852_v46 = vpop.f32.mrf.mxu0 }
 0x401   :  { %v3853_v48 = vadd.f32 %v3852_v46, %v3851_v40 }
 0x402   :  { %v3854_v49 = vpop.f32.mrf.mxu0 }
 0x403   :  { %v3293_v50 = vadd.f32 %v3853_v48, %v3253_v47 }
 0x404   :  { %v3855_v51 = vpop.f32.mrf.mxu0 }
 0x43e   :  { %v3873_v52 = vpop.f32.mrf.mxu1 }
 0x440   :  { %v3874_v53 = vpop.f32.mrf.mxu1 }
 0x441   :  { %v3875_v54 = vadd.f32 %v3874_v53, %v3873_v52 }
 0x442   :  { %v3876_v55 = vpop.f32.mrf.mxu1 }
 0x443   :  { %v3333_v21 = vadd.f32 %v3875_v54, %v3293_v50 }
 0x444   :  { %v3877_v56 = vpop.f32.mrf.mxu1 }
 0x47e   :  { %v3895_v59 = vpop.f32.mrf.mxu0 }
 0x480   :  { %v3896_v60 = vpop.f32.mrf.mxu0 }
 0x481   :  { %v3897_v61 = vadd.f32 %v3896_v60, %v3895_v59 }
 0x482   :  { %v3898_v62 = vpop.f32.mrf.mxu0 }
 0x483   :  { %v3373_v63 = vadd.f32 %v3897_v61, %v3333_v21 }
 0x484   :  { %v3899_v0 = vpop.f32.mrf.mxu0 }
 0x485   :  { %4097 = vtanh.f32 %v3373_v63 }
 0x492   :  { %v4098_v3 = vpop.eup %4097 }
 0x493   :  { %3379 = vst [vmem:[#allocation13] sm:$0xff] %v4098_v3 }
 0x494   :  { %4230 = shalt.err (!%p4227_p6)
}
 0x495   :  { %3389 = dma.vmem_to_hbm [thread:$0]  %s3387_s20, 128, %s4422_s9, [#allocation7]  }
 0x496   :  { %4249 = dma.done.wait [#allocation7], 128  }
 0x497   :  { %4250 = vsyncadd [#allocation7], 4294967168 }
 0x498   :  { %3393 = vsyncpa [#allocation6], 1 }
 0x499   :  { %3394 = vsyncpa [#allocation9], 1 }
 0x49a   :  { %3395 = vsyncpa [#allocation12], 1 }
 0x49b   :  { %3396 = vsyncpa [#allocation7], 1 }
 0x49c   :  { %3397 = vsyncmov [#allocation4] }
 0x49f   :  { %s3398_s1 = vpop.sfrf %3397 }
 0x4a0   :  { %p3811_p7 = scmp.ne.s32.totalorder %s3398_s1, 0 }
 0x4a2   :  { %3402 = shalt.err (%p3811_p7)  }
 0x4a3   :  { %3404 = vsyncmov [#allocation4 + $0x1] }
 0x4a6   :  { %s3405_s24 = vpop.sfrf %3404 }
 0x4a7   :  { %p3812_p8 = scmp.ne.s32.totalorder %s3405_s24, 0 }
 0x4a9   :  { %3409 = shalt.err (%p3812_p8)  }

</bundles_post_ra>
